<compile_context>
chip_gen: v5e
topology: v5e:2x2
jax: 0.10.0
libtpu: 0.0.40
codegen_flags: <defaults>
</compile_context>

<pallas_src>
import functools

import jax
import jax.numpy as jnp
from jax import lax
from jax.experimental import pallas as pl
from jax.experimental.pallas import tpu as pltpu


def _transblock_kernel(w_ref, x_ref, o_ref, *, cin, cout, th, tw):
    # w_ref: (Cout, Cin) f32 in SMEM       -- 1x1 conv weight (scalars)
    # x_ref: (Cin, TH, TW) in VMEM          -- NCHW tile (H in sublanes, W in lanes)
    # o_ref: (Cout, TH//2, TW//2) in VMEM   -- NCHW pooled output tile
    thp, twp = th // 2, tw // 2

    # Constant 0/1 selection matrices that compact even/odd rows / columns of the
    # conv output (built once per grid step, hoisted out of the channel loop).
    ri = lax.broadcasted_iota(jnp.int32, (thp, th), 0)   # pooled row index
    rh = lax.broadcasted_iota(jnp.int32, (thp, th), 1)   # input row index
    sel_row_even = (rh == 2 * ri).astype(jnp.float32)     # (THp, TH)
    sel_row_odd = (rh == 2 * ri + 1).astype(jnp.float32)
    cw = lax.broadcasted_iota(jnp.int32, (tw, twp), 0)   # input col index
    cj = lax.broadcasted_iota(jnp.int32, (tw, twp), 1)   # pooled col index
    sel_col_even = (cw == 2 * cj).astype(jnp.float32)     # (TW, TWp)
    sel_col_odd = (cw == 2 * cj + 1).astype(jnp.float32)

    for o in range(cout):
        # 1x1 conv (bias=False) for output channel o: VPU broadcast MACs over Cin.
        acc = w_ref[o, 0] * x_ref[0].astype(jnp.float32)
        for c in range(1, cin):
            acc = acc + w_ref[o, c] * x_ref[c].astype(jnp.float32)
        # MaxPool2d(2, 2): max over row pairs, then over column pairs, with the 2x
        # compaction done by exact 1.0/0.0 selection matmuls (MXU, otherwise idle).
        rows = jnp.maximum(
            jnp.dot(sel_row_even, acc, preferred_element_type=jnp.float32),
            jnp.dot(sel_row_odd, acc, preferred_element_type=jnp.float32))
        pooled = jnp.maximum(
            jnp.dot(rows, sel_col_even, preferred_element_type=jnp.float32),
            jnp.dot(rows, sel_col_odd, preferred_element_type=jnp.float32))
        o_ref[o, :, :] = pooled.astype(o_ref.dtype)


def _choose_spatial_tiles(H, W, Cin, itemsize, budget_bytes=2 * 1024 * 1024):
    """Pick (TH, TW) for the NCHW activation block (Cin, TH, TW).

    Constraints (Pallas (8,128) block rule + complete 2x2 pool windows):
      * TW == W, or TW a multiple of 256 dividing W (TW and TW//2 lane-aligned)
      * TH == H, or TH a multiple of 16 dividing H (TH and TH//2 sublane-aligned)
    The row tile is bounded so a double-buffered input block stays far inside every
    generation's VMEM budget (v7x has only 64 MiB physical / 32 MiB default scoped).
    """
    if W <= 512:
        tw = W
    else:
        tw_cands = [d for d in range(256, min(W, 1024) + 1, 256) if W % d == 0]
        tw = max(tw_cands) if tw_cands else W

    th_cands = [d for d in range(16, H, 16) if H % d == 0]
    if not th_cands:
        return H, tw
    fitting = [d for d in th_cands if Cin * d * tw * itemsize <= budget_bytes]
    th = max(fitting) if fitting else min(th_cands)
    return th, tw


def trans_block(x_nchw, conv_weight):
    """Forward of TransBlock: Conv2d(inc->outc, k=1, bias=False) then MaxPool2d(2, 2).

    x_nchw:      [B, Cin, H, W]     (f32 or bf16)
    conv_weight: [Cout, Cin, 1, 1]  (PyTorch layout)
    returns      [B, Cout, H//2, W//2] in x_nchw.dtype
    """
    B, Cin, H, W = x_nchw.shape
    Cout, Cin_w, kh, kw = conv_weight.shape
    assert Cin_w == Cin and kh == 1 and kw == 1

    # MaxPool2d(2,2) floors odd spatial dims; the conv is pointwise, so cropping the
    # trailing odd row/col up front is equivalent.
    Hc, Wc = (H // 2) * 2, (W // 2) * 2
    if (Hc, Wc) != (H, W):
        x_nchw = x_nchw[:, :, :Hc, :Wc]
    Hp, Wp = Hc // 2, Wc // 2

    w2d = conv_weight.reshape(Cout, Cin).astype(jnp.float32)

    itemsize = jnp.dtype(x_nchw.dtype).itemsize
    TH, TW = _choose_spatial_tiles(Hc, Wc, Cin, itemsize)
    THp, TWp = TH // 2, TW // 2
    grid = (B, Hc // TH, Wc // TW)

    kernel = functools.partial(
        _transblock_kernel, cin=Cin, cout=Cout, th=TH, tw=TW)

    return pl.pallas_call(
        kernel,
        out_shape=jax.ShapeDtypeStruct((B, Cout, Hp, Wp), x_nchw.dtype),
        grid_spec=pltpu.PrefetchScalarGridSpec(
            num_scalar_prefetch=0,
            grid=grid,
            in_specs=[
                # (Cout, Cin) conv weight, resident in SMEM (read as scalars).
                pl.BlockSpec(memory_space=pltpu.MemorySpace.SMEM),
                # NCHW activation tile: all channels, TH rows, TW cols.
                pl.BlockSpec((None, Cin, TH, TW), lambda b, i, j: (b, 0, i, j)),
            ],
            out_specs=pl.BlockSpec(
                (None, Cout, THp, TWp), lambda b, i, j: (b, 0, i, j)),
        ),
        compiler_params=pltpu.CompilerParams(
            dimension_semantics=("parallel", "parallel", "parallel"),
            vmem_limit_bytes=32 * 1024 * 1024,
        ),
    )(w2d, x_nchw)


def _reference(x_nchw, conv_weight):
    """Pure-JAX reference of the PyTorch forward (f32-accurate)."""
    B, Cin, H, W = x_nchw.shape
    Cout = conv_weight.shape[0]
    w = conv_weight[:, :, 0, 0]                               # [Cout, Cin]
    y = jnp.einsum('bchw,oc->bohw', x_nchw, w,
                   precision=lax.Precision.HIGHEST)           # 1x1 conv, no bias
    y = y.reshape(B, Cout, H // 2, 2, W // 2, 2)
    return jnp.max(y, axis=(3, 5))                            # MaxPool2d(2, 2)


if __name__ == "__main__":
    key = jax.random.PRNGKey(0)
    k_x, k_w = jax.random.split(key)

    B, inc, outc, H, W = 2, 4, 8, 16, 16
    x = jax.random.normal(k_x, (B, inc, H, W), dtype=jnp.float32)
    # Deterministic synthetic Conv2d weight: shape [outc, inc, 1, 1], bias=False.
    conv_w = jax.random.normal(k_w, (outc, inc, 1, 1), dtype=jnp.float32) * 0.1

    out = jax.block_until_ready(trans_block(x, conv_w))

    ref = _reference(x, conv_w)
    assert out.shape == (B, outc, H // 2, W // 2), out.shape
    # Conv accumulation is exact f32 on the VPU; the pool compaction goes through the
    # MXU (matmul by exact 1.0/0.0), so allow a small tolerance for MXU f32 rounding.
    assert jnp.allclose(out, ref, atol=1e-3, rtol=1e-3), (
        float(jnp.max(jnp.abs(out - ref))))

    print("KERNEL_OK")
</pallas_src>

<mosaic_0001>
module attributes {stable_mosaic.version = 11 : i64} {
  func.func @_transblock_kernel(%arg0: i32, %arg1: i32, %arg2: i32, %arg3: memref<8x4xf32, #tpu.memory_space<smem>>, %arg4: memref<1x4x16x16xf32, #tpu.memory_space<vmem>>, %arg5: memref<1x8x8x8xf32, #tpu.memory_space<vmem>>) attributes {dimension_semantics = [#tpu.dimension_semantics<parallel>, #tpu.dimension_semantics<parallel>, #tpu.dimension_semantics<parallel>], iteration_bounds = array<i64: 2, 1, 1>, scalar_prefetch = 0 : i64, scratch_operands = 0 : i64, tpu.core_type = #tpu.core_type<tc>, window_params = [{transform_indices = @transform_0, window_bounds = array<i64: 8, 4>}, {transform_indices = @transform_1, window_bounds = array<i64: 1, 4, 16, 16>}, {transform_indices = @transform_2, window_bounds = array<i64: 1, 8, 8, 8>}]} {
    %0 = tpu.iota {dimensions = array<i32: 0>} : vector<8x16xi32>
    %1 = tpu.iota {dimensions = array<i32: 1>} : vector<8x16xi32>
    %c2_i32 = arith.constant 2 : i32
    %2 = vector.broadcast %c2_i32 : i32 to vector<8x16xi32>
    %3 = arith.muli %2, %0 : vector<8x16xi32>
    %4 = arith.cmpi eq, %1, %3 : vector<8x16xi32>
    %5 = arith.extui %4 : vector<8x16xi1> to vector<8x16xi32>
    %6 = arith.sitofp %5 : vector<8x16xi32> to vector<8x16xf32>
    %c2_i32_0 = arith.constant 2 : i32
    %7 = vector.broadcast %c2_i32_0 : i32 to vector<8x16xi32>
    %8 = arith.muli %7, %0 : vector<8x16xi32>
    %c1_i32 = arith.constant 1 : i32
    %9 = vector.broadcast %c1_i32 : i32 to vector<8x16xi32>
    %10 = arith.addi %8, %9 : vector<8x16xi32>
    %11 = arith.cmpi eq, %1, %10 : vector<8x16xi32>
    %12 = arith.extui %11 : vector<8x16xi1> to vector<8x16xi32>
    %13 = arith.sitofp %12 : vector<8x16xi32> to vector<8x16xf32>
    %14 = tpu.iota {dimensions = array<i32: 0>} : vector<16x8xi32>
    %15 = tpu.iota {dimensions = array<i32: 1>} : vector<16x8xi32>
    %c2_i32_1 = arith.constant 2 : i32
    %16 = vector.broadcast %c2_i32_1 : i32 to vector<16x8xi32>
    %17 = arith.muli %16, %15 : vector<16x8xi32>
    %18 = arith.cmpi eq, %14, %17 : vector<16x8xi32>
    %19 = arith.extui %18 : vector<16x8xi1> to vector<16x8xi32>
    %20 = arith.sitofp %19 : vector<16x8xi32> to vector<16x8xf32>
    %c2_i32_2 = arith.constant 2 : i32
    %21 = vector.broadcast %c2_i32_2 : i32 to vector<16x8xi32>
    %22 = arith.muli %21, %15 : vector<16x8xi32>
    %c1_i32_3 = arith.constant 1 : i32
    %23 = vector.broadcast %c1_i32_3 : i32 to vector<16x8xi32>
    %24 = arith.addi %22, %23 : vector<16x8xi32>
    %25 = arith.cmpi eq, %14, %24 : vector<16x8xi32>
    %26 = arith.extui %25 : vector<16x8xi1> to vector<16x8xi32>
    %27 = arith.sitofp %26 : vector<16x8xi32> to vector<16x8xf32>
    %c0 = arith.constant 0 : index
    %c0_4 = arith.constant 0 : index
    %28 = memref.load %arg3[%c0, %c0_4] : memref<8x4xf32, #tpu.memory_space<smem>>
    %c0_5 = arith.constant 0 : index
    %c0_6 = arith.constant 0 : index
    %c0_7 = arith.constant 0 : index
    %c0_8 = arith.constant 0 : index
    %29 = vector.load %arg4[%c0_5, %c0_6, %c0_7, %c0_8] : memref<1x4x16x16xf32, #tpu.memory_space<vmem>>, vector<1x1x16x16xf32>
    %30 = vector.shape_cast %29 : vector<1x1x16x16xf32> to vector<16x16xf32>
    %31 = vector.broadcast %28 : f32 to vector<16x16xf32>
    %32 = arith.mulf %31, %30 : vector<16x16xf32>
    %c0_9 = arith.constant 0 : index
    %c1 = arith.constant 1 : index
    %33 = memref.load %arg3[%c0_9, %c1] : memref<8x4xf32, #tpu.memory_space<smem>>
    %c0_10 = arith.constant 0 : index
    %c1_11 = arith.constant 1 : index
    %c0_12 = arith.constant 0 : index
    %c0_13 = arith.constant 0 : index
    %34 = vector.load %arg4[%c0_10, %c1_11, %c0_12, %c0_13] : memref<1x4x16x16xf32, #tpu.memory_space<vmem>>, vector<1x1x16x16xf32>
    %35 = vector.shape_cast %34 : vector<1x1x16x16xf32> to vector<16x16xf32>
    %36 = vector.broadcast %33 : f32 to vector<16x16xf32>
    %37 = arith.mulf %36, %35 : vector<16x16xf32>
    %38 = arith.addf %32, %37 : vector<16x16xf32>
    %c0_14 = arith.constant 0 : index
    %c2 = arith.constant 2 : index
    %39 = memref.load %arg3[%c0_14, %c2] : memref<8x4xf32, #tpu.memory_space<smem>>
    %c0_15 = arith.constant 0 : index
    %c2_16 = arith.constant 2 : index
    %c0_17 = arith.constant 0 : index
    %c0_18 = arith.constant 0 : index
    %40 = vector.load %arg4[%c0_15, %c2_16, %c0_17, %c0_18] : memref<1x4x16x16xf32, #tpu.memory_space<vmem>>, vector<1x1x16x16xf32>
    %41 = vector.shape_cast %40 : vector<1x1x16x16xf32> to vector<16x16xf32>
    %42 = vector.broadcast %39 : f32 to vector<16x16xf32>
    %43 = arith.mulf %42, %41 : vector<16x16xf32>
    %44 = arith.addf %38, %43 : vector<16x16xf32>
    %c0_19 = arith.constant 0 : index
    %c3 = arith.constant 3 : index
    %45 = memref.load %arg3[%c0_19, %c3] : memref<8x4xf32, #tpu.memory_space<smem>>
    %c0_20 = arith.constant 0 : index
    %c3_21 = arith.constant 3 : index
    %c0_22 = arith.constant 0 : index
    %c0_23 = arith.constant 0 : index
    %46 = vector.load %arg4[%c0_20, %c3_21, %c0_22, %c0_23] : memref<1x4x16x16xf32, #tpu.memory_space<vmem>>, vector<1x1x16x16xf32>
    %47 = vector.shape_cast %46 : vector<1x1x16x16xf32> to vector<16x16xf32>
    %48 = vector.broadcast %45 : f32 to vector<16x16xf32>
    %49 = arith.mulf %48, %47 : vector<16x16xf32>
    %50 = arith.addf %44, %49 : vector<16x16xf32>
    %cst = arith.constant dense<0.000000e+00> : vector<8x16xf32>
    %51 = tpu.matmul %6, %50, %cst {dimension_numbers = #tpu.dot_dimension_numbers<[1], [0], [0], [1], [0, 0, 1, 1], [], []>} : vector<8x16xf32>, vector<16x16xf32>, vector<8x16xf32> -> vector<8x16xf32>
    %cst_24 = arith.constant dense<0.000000e+00> : vector<8x16xf32>
    %52 = tpu.matmul %13, %50, %cst_24 {dimension_numbers = #tpu.dot_dimension_numbers<[1], [0], [0], [1], [0, 0, 1, 1], [], []>} : vector<8x16xf32>, vector<16x16xf32>, vector<8x16xf32> -> vector<8x16xf32>
    %53 = arith.maximumf %51, %52 : vector<8x16xf32>
    %cst_25 = arith.constant dense<0.000000e+00> : vector<8x8xf32>
    %54 = tpu.matmul %53, %20, %cst_25 {dimension_numbers = #tpu.dot_dimension_numbers<[1], [0], [0], [1], [0, 0, 1, 1], [], []>} : vector<8x16xf32>, vector<16x8xf32>, vector<8x8xf32> -> vector<8x8xf32>
    %cst_26 = arith.constant dense<0.000000e+00> : vector<8x8xf32>
    %55 = tpu.matmul %53, %27, %cst_26 {dimension_numbers = #tpu.dot_dimension_numbers<[1], [0], [0], [1], [0, 0, 1, 1], [], []>} : vector<8x16xf32>, vector<16x8xf32>, vector<8x8xf32> -> vector<8x8xf32>
    %56 = arith.maximumf %54, %55 : vector<8x8xf32>
    %c0_27 = arith.constant 0 : index
    %c0_28 = arith.constant 0 : index
    %c0_29 = arith.constant 0 : index
    %c0_30 = arith.constant 0 : index
    %57 = vector.load %arg5[%c0_27, %c0_28, %c0_29, %c0_30] : memref<1x8x8x8xf32, #tpu.memory_space<vmem>>, vector<1x1x8x8xf32>
    %58 = vector.shape_cast %57 : vector<1x1x8x8xf32> to vector<8x8xf32>
    %59 = vector.shape_cast %56 : vector<8x8xf32> to vector<1x1x8x8xf32>
    tpu.vector_store %arg5[%c0_27, %c0_28, %c0_29, %c0_30], %59 {strides = array<i32>} : memref<1x8x8x8xf32, #tpu.memory_space<vmem>>, vector<1x1x8x8xf32>,
    %c1_31 = arith.constant 1 : index
    %c0_32 = arith.constant 0 : index
    %60 = memref.load %arg3[%c1_31, %c0_32] : memref<8x4xf32, #tpu.memory_space<smem>>
    %c0_33 = arith.constant 0 : index
    %c0_34 = arith.constant 0 : index
    %c0_35 = arith.constant 0 : index
    %c0_36 = arith.constant 0 : index
    %61 = vector.load %arg4[%c0_33, %c0_34, %c0_35, %c0_36] : memref<1x4x16x16xf32, #tpu.memory_space<vmem>>, vector<1x1x16x16xf32>
    %62 = vector.shape_cast %61 : vector<1x1x16x16xf32> to vector<16x16xf32>
    %63 = vector.broadcast %60 : f32 to vector<16x16xf32>
    %64 = arith.mulf %63, %62 : vector<16x16xf32>
    %c1_37 = arith.constant 1 : index
    %c1_38 = arith.constant 1 : index
    %65 = memref.load %arg3[%c1_37, %c1_38] : memref<8x4xf32, #tpu.memory_space<smem>>
    %c0_39 = arith.constant 0 : index
    %c1_40 = arith.constant 1 : index
    %c0_41 = arith.constant 0 : index
    %c0_42 = arith.constant 0 : index
    %66 = vector.load %arg4[%c0_39, %c1_40, %c0_41, %c0_42] : memref<1x4x16x16xf32, #tpu.memory_space<vmem>>, vector<1x1x16x16xf32>
    %67 = vector.shape_cast %66 : vector<1x1x16x16xf32> to vector<16x16xf32>
    %68 = vector.broadcast %65 : f32 to vector<16x16xf32>
    %69 = arith.mulf %68, %67 : vector<16x16xf32>
    %70 = arith.addf %64, %69 : vector<16x16xf32>
    %c1_43 = arith.constant 1 : index
    %c2_44 = arith.constant 2 : index
    %71 = memref.load %arg3[%c1_43, %c2_44] : memref<8x4xf32, #tpu.memory_space<smem>>
    %c0_45 = arith.constant 0 : index
    %c2_46 = arith.constant 2 : index
    %c0_47 = arith.constant 0 : index
    %c0_48 = arith.constant 0 : index
    %72 = vector.load %arg4[%c0_45, %c2_46, %c0_47, %c0_48] : memref<1x4x16x16xf32, #tpu.memory_space<vmem>>, vector<1x1x16x16xf32>
    %73 = vector.shape_cast %72 : vector<1x1x16x16xf32> to vector<16x16xf32>
    %74 = vector.broadcast %71 : f32 to vector<16x16xf32>
    %75 = arith.mulf %74, %73 : vector<16x16xf32>
    %76 = arith.addf %70, %75 : vector<16x16xf32>
    %c1_49 = arith.constant 1 : index
    %c3_50 = arith.constant 3 : index
    %77 = memref.load %arg3[%c1_49, %c3_50] : memref<8x4xf32, #tpu.memory_space<smem>>
    %c0_51 = arith.constant 0 : index
    %c3_52 = arith.constant 3 : index
    %c0_53 = arith.constant 0 : index
    %c0_54 = arith.constant 0 : index
    %78 = vector.load %arg4[%c0_51, %c3_52, %c0_53, %c0_54] : memref<1x4x16x16xf32, #tpu.memory_space<vmem>>, vector<1x1x16x16xf32>
    %79 = vector.shape_cast %78 : vector<1x1x16x16xf32> to vector<16x16xf32>
    %80 = vector.broadcast %77 : f32 to vector<16x16xf32>
    %81 = arith.mulf %80, %79 : vector<16x16xf32>
    %82 = arith.addf %76, %81 : vector<16x16xf32>
    %cst_55 = arith.constant dense<0.000000e+00> : vector<8x16xf32>
    %83 = tpu.matmul %6, %82, %cst_55 {dimension_numbers = #tpu.dot_dimension_numbers<[1], [0], [0], [1], [0, 0, 1, 1], [], []>} : vector<8x16xf32>, vector<16x16xf32>, vector<8x16xf32> -> vector<8x16xf32>
    %cst_56 = arith.constant dense<0.000000e+00> : vector<8x16xf32>
    %84 = tpu.matmul %13, %82, %cst_56 {dimension_numbers = #tpu.dot_dimension_numbers<[1], [0], [0], [1], [0, 0, 1, 1], [], []>} : vector<8x16xf32>, vector<16x16xf32>, vector<8x16xf32> -> vector<8x16xf32>
    %85 = arith.maximumf %83, %84 : vector<8x16xf32>
    %cst_57 = arith.constant dense<0.000000e+00> : vector<8x8xf32>
    %86 = tpu.matmul %85, %20, %cst_57 {dimension_numbers = #tpu.dot_dimension_numbers<[1], [0], [0], [1], [0, 0, 1, 1], [], []>} : vector<8x16xf32>, vector<16x8xf32>, vector<8x8xf32> -> vector<8x8xf32>
    %cst_58 = arith.constant dense<0.000000e+00> : vector<8x8xf32>
    %87 = tpu.matmul %85, %27, %cst_58 {dimension_numbers = #tpu.dot_dimension_numbers<[1], [0], [0], [1], [0, 0, 1, 1], [], []>} : vector<8x16xf32>, vector<16x8xf32>, vector<8x8xf32> -> vector<8x8xf32>
    %88 = arith.maximumf %86, %87 : vector<8x8xf32>
    %c0_59 = arith.constant 0 : index
    %c1_60 = arith.constant 1 : index
    %c0_61 = arith.constant 0 : index
    %c0_62 = arith.constant 0 : index
    %89 = vector.load %arg5[%c0_59, %c1_60, %c0_61, %c0_62] : memref<1x8x8x8xf32, #tpu.memory_space<vmem>>, vector<1x1x8x8xf32>
    %90 = vector.shape_cast %89 : vector<1x1x8x8xf32> to vector<8x8xf32>
    %91 = vector.shape_cast %88 : vector<8x8xf32> to vector<1x1x8x8xf32>
    tpu.vector_store %arg5[%c0_59, %c1_60, %c0_61, %c0_62], %91 {strides = array<i32>} : memref<1x8x8x8xf32, #tpu.memory_space<vmem>>, vector<1x1x8x8xf32>,
    %c2_63 = arith.constant 2 : index
    %c0_64 = arith.constant 0 : index
    %92 = memref.load %arg3[%c2_63, %c0_64] : memref<8x4xf32, #tpu.memory_space<smem>>
    %c0_65 = arith.constant 0 : index
    %c0_66 = arith.constant 0 : index
    %c0_67 = arith.constant 0 : index
    %c0_68 = arith.constant 0 : index
    %93 = vector.load %arg4[%c0_65, %c0_66, %c0_67, %c0_68] : memref<1x4x16x16xf32, #tpu.memory_space<vmem>>, vector<1x1x16x16xf32>
    %94 = vector.shape_cast %93 : vector<1x1x16x16xf32> to vector<16x16xf32>
    %95 = vector.broadcast %92 : f32 to vector<16x16xf32>
    %96 = arith.mulf %95, %94 : vector<16x16xf32>
    %c2_69 = arith.constant 2 : index
    %c1_70 = arith.constant 1 : index
    %97 = memref.load %arg3[%c2_69, %c1_70] : memref<8x4xf32, #tpu.memory_space<smem>>
    %c0_71 = arith.constant 0 : index
    %c1_72 = arith.constant 1 : index
    %c0_73 = arith.constant 0 : index
    %c0_74 = arith.constant 0 : index
    %98 = vector.load %arg4[%c0_71, %c1_72, %c0_73, %c0_74] : memref<1x4x16x16xf32, #tpu.memory_space<vmem>>, vector<1x1x16x16xf32>
    %99 = vector.shape_cast %98 : vector<1x1x16x16xf32> to vector<16x16xf32>
    %100 = vector.broadcast %97 : f32 to vector<16x16xf32>
    %101 = arith.mulf %100, %99 : vector<16x16xf32>
    %102 = arith.addf %96, %101 : vector<16x16xf32>
    %c2_75 = arith.constant 2 : index
    %c2_76 = arith.constant 2 : index
    %103 = memref.load %arg3[%c2_75, %c2_76] : memref<8x4xf32, #tpu.memory_space<smem>>
    %c0_77 = arith.constant 0 : index
    %c2_78 = arith.constant 2 : index
    %c0_79 = arith.constant 0 : index
    %c0_80 = arith.constant 0 : index
    %104 = vector.load %arg4[%c0_77, %c2_78, %c0_79, %c0_80] : memref<1x4x16x16xf32, #tpu.memory_space<vmem>>, vector<1x1x16x16xf32>
    %105 = vector.shape_cast %104 : vector<1x1x16x16xf32> to vector<16x16xf32>
    %106 = vector.broadcast %103 : f32 to vector<16x16xf32>
    %107 = arith.mulf %106, %105 : vector<16x16xf32>
    %108 = arith.addf %102, %107 : vector<16x16xf32>
    %c2_81 = arith.constant 2 : index
    %c3_82 = arith.constant 3 : index
    %109 = memref.load %arg3[%c2_81, %c3_82] : memref<8x4xf32, #tpu.memory_space<smem>>
    %c0_83 = arith.constant 0 : index
    %c3_84 = arith.constant 3 : index
    %c0_85 = arith.constant 0 : index
    %c0_86 = arith.constant 0 : index
    %110 = vector.load %arg4[%c0_83, %c3_84, %c0_85, %c0_86] : memref<1x4x16x16xf32, #tpu.memory_space<vmem>>, vector<1x1x16x16xf32>
    %111 = vector.shape_cast %110 : vector<1x1x16x16xf32> to vector<16x16xf32>
    %112 = vector.broadcast %109 : f32 to vector<16x16xf32>
    %113 = arith.mulf %112, %111 : vector<16x16xf32>
    %114 = arith.addf %108, %113 : vector<16x16xf32>
    %cst_87 = arith.constant dense<0.000000e+00> : vector<8x16xf32>
    %115 = tpu.matmul %6, %114, %cst_87 {dimension_numbers = #tpu.dot_dimension_numbers<[1], [0], [0], [1], [0, 0, 1, 1], [], []>} : vector<8x16xf32>, vector<16x16xf32>, vector<8x16xf32> -> vector<8x16xf32>
    %cst_88 = arith.constant dense<0.000000e+00> : vector<8x16xf32>
    %116 = tpu.matmul %13, %114, %cst_88 {dimension_numbers = #tpu.dot_dimension_numbers<[1], [0], [0], [1], [0, 0, 1, 1], [], []>} : vector<8x16xf32>, vector<16x16xf32>, vector<8x16xf32> -> vector<8x16xf32>
    %117 = arith.maximumf %115, %116 : vector<8x16xf32>
    %cst_89 = arith.constant dense<0.000000e+00> : vector<8x8xf32>
    %118 = tpu.matmul %117, %20, %cst_89 {dimension_numbers = #tpu.dot_dimension_numbers<[1], [0], [0], [1], [0, 0, 1, 1], [], []>} : vector<8x16xf32>, vector<16x8xf32>, vector<8x8xf32> -> vector<8x8xf32>
    %cst_90 = arith.constant dense<0.000000e+00> : vector<8x8xf32>
    %119 = tpu.matmul %117, %27, %cst_90 {dimension_numbers = #tpu.dot_dimension_numbers<[1], [0], [0], [1], [0, 0, 1, 1], [], []>} : vector<8x16xf32>, vector<16x8xf32>, vector<8x8xf32> -> vector<8x8xf32>
    %120 = arith.maximumf %118, %119 : vector<8x8xf32>
    %c0_91 = arith.constant 0 : index
    %c2_92 = arith.constant 2 : index
    %c0_93 = arith.constant 0 : index
    %c0_94 = arith.constant 0 : index
    %121 = vector.load %arg5[%c0_91, %c2_92, %c0_93, %c0_94] : memref<1x8x8x8xf32, #tpu.memory_space<vmem>>, vector<1x1x8x8xf32>
    %122 = vector.shape_cast %121 : vector<1x1x8x8xf32> to vector<8x8xf32>
    %123 = vector.shape_cast %120 : vector<8x8xf32> to vector<1x1x8x8xf32>
    tpu.vector_store %arg5[%c0_91, %c2_92, %c0_93, %c0_94], %123 {strides = array<i32>} : memref<1x8x8x8xf32, #tpu.memory_space<vmem>>, vector<1x1x8x8xf32>,
    %c3_95 = arith.constant 3 : index
    %c0_96 = arith.constant 0 : index
    %124 = memref.load %arg3[%c3_95, %c0_96] : memref<8x4xf32, #tpu.memory_space<smem>>
    %c0_97 = arith.constant 0 : index
    %c0_98 = arith.constant 0 : index
    %c0_99 = arith.constant 0 : index
    %c0_100 = arith.constant 0 : index
    %125 = vector.load %arg4[%c0_97, %c0_98, %c0_99, %c0_100] : memref<1x4x16x16xf32, #tpu.memory_space<vmem>>, vector<1x1x16x16xf32>
    %126 = vector.shape_cast %125 : vector<1x1x16x16xf32> to vector<16x16xf32>
    %127 = vector.broadcast %124 : f32 to vector<16x16xf32>
    %128 = arith.mulf %127, %126 : vector<16x16xf32>
    %c3_101 = arith.constant 3 : index
    %c1_102 = arith.constant 1 : index
    %129 = memref.load %arg3[%c3_101, %c1_102] : memref<8x4xf32, #tpu.memory_space<smem>>
    %c0_103 = arith.constant 0 : index
    %c1_104 = arith.constant 1 : index
    %c0_105 = arith.constant 0 : index
    %c0_106 = arith.constant 0 : index
    %130 = vector.load %arg4[%c0_103, %c1_104, %c0_105, %c0_106] : memref<1x4x16x16xf32, #tpu.memory_space<vmem>>, vector<1x1x16x16xf32>
    %131 = vector.shape_cast %130 : vector<1x1x16x16xf32> to vector<16x16xf32>
    %132 = vector.broadcast %129 : f32 to vector<16x16xf32>
    %133 = arith.mulf %132, %131 : vector<16x16xf32>
    %134 = arith.addf %128, %133 : vector<16x16xf32>
    %c3_107 = arith.constant 3 : index
    %c2_108 = arith.constant 2 : index
    %135 = memref.load %arg3[%c3_107, %c2_108] : memref<8x4xf32, #tpu.memory_space<smem>>
    %c0_109 = arith.constant 0 : index
    %c2_110 = arith.constant 2 : index
    %c0_111 = arith.constant 0 : index
    %c0_112 = arith.constant 0 : index
    %136 = vector.load %arg4[%c0_109, %c2_110, %c0_111, %c0_112] : memref<1x4x16x16xf32, #tpu.memory_space<vmem>>, vector<1x1x16x16xf32>
    %137 = vector.shape_cast %136 : vector<1x1x16x16xf32> to vector<16x16xf32>
    %138 = vector.broadcast %135 : f32 to vector<16x16xf32>
    %139 = arith.mulf %138, %137 : vector<16x16xf32>
    %140 = arith.addf %134, %139 : vector<16x16xf32>
    %c3_113 = arith.constant 3 : index
    %c3_114 = arith.constant 3 : index
    %141 = memref.load %arg3[%c3_113, %c3_114] : memref<8x4xf32, #tpu.memory_space<smem>>
    %c0_115 = arith.constant 0 : index
    %c3_116 = arith.constant 3 : index
    %c0_117 = arith.constant 0 : index
    %c0_118 = arith.constant 0 : index
    %142 = vector.load %arg4[%c0_115, %c3_116, %c0_117, %c0_118] : memref<1x4x16x16xf32, #tpu.memory_space<vmem>>, vector<1x1x16x16xf32>
    %143 = vector.shape_cast %142 : vector<1x1x16x16xf32> to vector<16x16xf32>
    %144 = vector.broadcast %141 : f32 to vector<16x16xf32>
    %145 = arith.mulf %144, %143 : vector<16x16xf32>
    %146 = arith.addf %140, %145 : vector<16x16xf32>
    %cst_119 = arith.constant dense<0.000000e+00> : vector<8x16xf32>
    %147 = tpu.matmul %6, %146, %cst_119 {dimension_numbers = #tpu.dot_dimension_numbers<[1], [0], [0], [1], [0, 0, 1, 1], [], []>} : vector<8x16xf32>, vector<16x16xf32>, vector<8x16xf32> -> vector<8x16xf32>
    %cst_120 = arith.constant dense<0.000000e+00> : vector<8x16xf32>
    %148 = tpu.matmul %13, %146, %cst_120 {dimension_numbers = #tpu.dot_dimension_numbers<[1], [0], [0], [1], [0, 0, 1, 1], [], []>} : vector<8x16xf32>, vector<16x16xf32>, vector<8x16xf32> -> vector<8x16xf32>
    %149 = arith.maximumf %147, %148 : vector<8x16xf32>
    %cst_121 = arith.constant dense<0.000000e+00> : vector<8x8xf32>
    %150 = tpu.matmul %149, %20, %cst_121 {dimension_numbers = #tpu.dot_dimension_numbers<[1], [0], [0], [1], [0, 0, 1, 1], [], []>} : vector<8x16xf32>, vector<16x8xf32>, vector<8x8xf32> -> vector<8x8xf32>
    %cst_122 = arith.constant dense<0.000000e+00> : vector<8x8xf32>
    %151 = tpu.matmul %149, %27, %cst_122 {dimension_numbers = #tpu.dot_dimension_numbers<[1], [0], [0], [1], [0, 0, 1, 1], [], []>} : vector<8x16xf32>, vector<16x8xf32>, vector<8x8xf32> -> vector<8x8xf32>
    %152 = arith.maximumf %150, %151 : vector<8x8xf32>
    %c0_123 = arith.constant 0 : index
    %c3_124 = arith.constant 3 : index
    %c0_125 = arith.constant 0 : index
    %c0_126 = arith.constant 0 : index
    %153 = vector.load %arg5[%c0_123, %c3_124, %c0_125, %c0_126] : memref<1x8x8x8xf32, #tpu.memory_space<vmem>>, vector<1x1x8x8xf32>
    %154 = vector.shape_cast %153 : vector<1x1x8x8xf32> to vector<8x8xf32>
    %155 = vector.shape_cast %152 : vector<8x8xf32> to vector<1x1x8x8xf32>
    tpu.vector_store %arg5[%c0_123, %c3_124, %c0_125, %c0_126], %155 {strides = array<i32>} : memref<1x8x8x8xf32, #tpu.memory_space<vmem>>, vector<1x1x8x8xf32>,
    %c4 = arith.constant 4 : index
    %c0_127 = arith.constant 0 : index
    %156 = memref.load %arg3[%c4, %c0_127] : memref<8x4xf32, #tpu.memory_space<smem>>
    %c0_128 = arith.constant 0 : index
    %c0_129 = arith.constant 0 : index
    %c0_130 = arith.constant 0 : index
    %c0_131 = arith.constant 0 : index
    %157 = vector.load %arg4[%c0_128, %c0_129, %c0_130, %c0_131] : memref<1x4x16x16xf32, #tpu.memory_space<vmem>>, vector<1x1x16x16xf32>
    %158 = vector.shape_cast %157 : vector<1x1x16x16xf32> to vector<16x16xf32>
    %159 = vector.broadcast %156 : f32 to vector<16x16xf32>
    %160 = arith.mulf %159, %158 : vector<16x16xf32>
    %c4_132 = arith.constant 4 : index
    %c1_133 = arith.constant 1 : index
    %161 = memref.load %arg3[%c4_132, %c1_133] : memref<8x4xf32, #tpu.memory_space<smem>>
    %c0_134 = arith.constant 0 : index
    %c1_135 = arith.constant 1 : index
    %c0_136 = arith.constant 0 : index
    %c0_137 = arith.constant 0 : index
    %162 = vector.load %arg4[%c0_134, %c1_135, %c0_136, %c0_137] : memref<1x4x16x16xf32, #tpu.memory_space<vmem>>, vector<1x1x16x16xf32>
    %163 = vector.shape_cast %162 : vector<1x1x16x16xf32> to vector<16x16xf32>
    %164 = vector.broadcast %161 : f32 to vector<16x16xf32>
    %165 = arith.mulf %164, %163 : vector<16x16xf32>
    %166 = arith.addf %160, %165 : vector<16x16xf32>
    %c4_138 = arith.constant 4 : index
    %c2_139 = arith.constant 2 : index
    %167 = memref.load %arg3[%c4_138, %c2_139] : memref<8x4xf32, #tpu.memory_space<smem>>
    %c0_140 = arith.constant 0 : index
    %c2_141 = arith.constant 2 : index
    %c0_142 = arith.constant 0 : index
    %c0_143 = arith.constant 0 : index
    %168 = vector.load %arg4[%c0_140, %c2_141, %c0_142, %c0_143] : memref<1x4x16x16xf32, #tpu.memory_space<vmem>>, vector<1x1x16x16xf32>
    %169 = vector.shape_cast %168 : vector<1x1x16x16xf32> to vector<16x16xf32>
    %170 = vector.broadcast %167 : f32 to vector<16x16xf32>
    %171 = arith.mulf %170, %169 : vector<16x16xf32>
    %172 = arith.addf %166, %171 : vector<16x16xf32>
    %c4_144 = arith.constant 4 : index
    %c3_145 = arith.constant 3 : index
    %173 = memref.load %arg3[%c4_144, %c3_145] : memref<8x4xf32, #tpu.memory_space<smem>>
    %c0_146 = arith.constant 0 : index
    %c3_147 = arith.constant 3 : index
    %c0_148 = arith.constant 0 : index
    %c0_149 = arith.constant 0 : index
    %174 = vector.load %arg4[%c0_146, %c3_147, %c0_148, %c0_149] : memref<1x4x16x16xf32, #tpu.memory_space<vmem>>, vector<1x1x16x16xf32>
    %175 = vector.shape_cast %174 : vector<1x1x16x16xf32> to vector<16x16xf32>
    %176 = vector.broadcast %173 : f32 to vector<16x16xf32>
    %177 = arith.mulf %176, %175 : vector<16x16xf32>
    %178 = arith.addf %172, %177 : vector<16x16xf32>
    %cst_150 = arith.constant dense<0.000000e+00> : vector<8x16xf32>
    %179 = tpu.matmul %6, %178, %cst_150 {dimension_numbers = #tpu.dot_dimension_numbers<[1], [0], [0], [1], [0, 0, 1, 1], [], []>} : vector<8x16xf32>, vector<16x16xf32>, vector<8x16xf32> -> vector<8x16xf32>
    %cst_151 = arith.constant dense<0.000000e+00> : vector<8x16xf32>
    %180 = tpu.matmul %13, %178, %cst_151 {dimension_numbers = #tpu.dot_dimension_numbers<[1], [0], [0], [1], [0, 0, 1, 1], [], []>} : vector<8x16xf32>, vector<16x16xf32>, vector<8x16xf32> -> vector<8x16xf32>
    %181 = arith.maximumf %179, %180 : vector<8x16xf32>
    %cst_152 = arith.constant dense<0.000000e+00> : vector<8x8xf32>
    %182 = tpu.matmul %181, %20, %cst_152 {dimension_numbers = #tpu.dot_dimension_numbers<[1], [0], [0], [1], [0, 0, 1, 1], [], []>} : vector<8x16xf32>, vector<16x8xf32>, vector<8x8xf32> -> vector<8x8xf32>
    %cst_153 = arith.constant dense<0.000000e+00> : vector<8x8xf32>
    %183 = tpu.matmul %181, %27, %cst_153 {dimension_numbers = #tpu.dot_dimension_numbers<[1], [0], [0], [1], [0, 0, 1, 1], [], []>} : vector<8x16xf32>, vector<16x8xf32>, vector<8x8xf32> -> vector<8x8xf32>
    %184 = arith.maximumf %182, %183 : vector<8x8xf32>
    %c0_154 = arith.constant 0 : index
    %c4_155 = arith.constant 4 : index
    %c0_156 = arith.constant 0 : index
    %c0_157 = arith.constant 0 : index
    %185 = vector.load %arg5[%c0_154, %c4_155, %c0_156, %c0_157] : memref<1x8x8x8xf32, #tpu.memory_space<vmem>>, vector<1x1x8x8xf32>
    %186 = vector.shape_cast %185 : vector<1x1x8x8xf32> to vector<8x8xf32>
    %187 = vector.shape_cast %184 : vector<8x8xf32> to vector<1x1x8x8xf32>
    tpu.vector_store %arg5[%c0_154, %c4_155, %c0_156, %c0_157], %187 {strides = array<i32>} : memref<1x8x8x8xf32, #tpu.memory_space<vmem>>, vector<1x1x8x8xf32>,
    %c5 = arith.constant 5 : index
    %c0_158 = arith.constant 0 : index
    %188 = memref.load %arg3[%c5, %c0_158] : memref<8x4xf32, #tpu.memory_space<smem>>
    %c0_159 = arith.constant 0 : index
    %c0_160 = arith.constant 0 : index
    %c0_161 = arith.constant 0 : index
    %c0_162 = arith.constant 0 : index
    %189 = vector.load %arg4[%c0_159, %c0_160, %c0_161, %c0_162] : memref<1x4x16x16xf32, #tpu.memory_space<vmem>>, vector<1x1x16x16xf32>
    %190 = vector.shape_cast %189 : vector<1x1x16x16xf32> to vector<16x16xf32>
    %191 = vector.broadcast %188 : f32 to vector<16x16xf32>
    %192 = arith.mulf %191, %190 : vector<16x16xf32>
    %c5_163 = arith.constant 5 : index
    %c1_164 = arith.constant 1 : index
    %193 = memref.load %arg3[%c5_163, %c1_164] : memref<8x4xf32, #tpu.memory_space<smem>>
    %c0_165 = arith.constant 0 : index
    %c1_166 = arith.constant 1 : index
    %c0_167 = arith.constant 0 : index
    %c0_168 = arith.constant 0 : index
    %194 = vector.load %arg4[%c0_165, %c1_166, %c0_167, %c0_168] : memref<1x4x16x16xf32, #tpu.memory_space<vmem>>, vector<1x1x16x16xf32>
    %195 = vector.shape_cast %194 : vector<1x1x16x16xf32> to vector<16x16xf32>
    %196 = vector.broadcast %193 : f32 to vector<16x16xf32>
    %197 = arith.mulf %196, %195 : vector<16x16xf32>
    %198 = arith.addf %192, %197 : vector<16x16xf32>
    %c5_169 = arith.constant 5 : index
    %c2_170 = arith.constant 2 : index
    %199 = memref.load %arg3[%c5_169, %c2_170] : memref<8x4xf32, #tpu.memory_space<smem>>
    %c0_171 = arith.constant 0 : index
    %c2_172 = arith.constant 2 : index
    %c0_173 = arith.constant 0 : index
    %c0_174 = arith.constant 0 : index
    %200 = vector.load %arg4[%c0_171, %c2_172, %c0_173, %c0_174] : memref<1x4x16x16xf32, #tpu.memory_space<vmem>>, vector<1x1x16x16xf32>
    %201 = vector.shape_cast %200 : vector<1x1x16x16xf32> to vector<16x16xf32>
    %202 = vector.broadcast %199 : f32 to vector<16x16xf32>
    %203 = arith.mulf %202, %201 : vector<16x16xf32>
    %204 = arith.addf %198, %203 : vector<16x16xf32>
    %c5_175 = arith.constant 5 : index
    %c3_176 = arith.constant 3 : index
    %205 = memref.load %arg3[%c5_175, %c3_176] : memref<8x4xf32, #tpu.memory_space<smem>>
    %c0_177 = arith.constant 0 : index
    %c3_178 = arith.constant 3 : index
    %c0_179 = arith.constant 0 : index
    %c0_180 = arith.constant 0 : index
    %206 = vector.load %arg4[%c0_177, %c3_178, %c0_179, %c0_180] : memref<1x4x16x16xf32, #tpu.memory_space<vmem>>, vector<1x1x16x16xf32>
    %207 = vector.shape_cast %206 : vector<1x1x16x16xf32> to vector<16x16xf32>
    %208 = vector.broadcast %205 : f32 to vector<16x16xf32>
    %209 = arith.mulf %208, %207 : vector<16x16xf32>
    %210 = arith.addf %204, %209 : vector<16x16xf32>
    %cst_181 = arith.constant dense<0.000000e+00> : vector<8x16xf32>
    %211 = tpu.matmul %6, %210, %cst_181 {dimension_numbers = #tpu.dot_dimension_numbers<[1], [0], [0], [1], [0, 0, 1, 1], [], []>} : vector<8x16xf32>, vector<16x16xf32>, vector<8x16xf32> -> vector<8x16xf32>
    %cst_182 = arith.constant dense<0.000000e+00> : vector<8x16xf32>
    %212 = tpu.matmul %13, %210, %cst_182 {dimension_numbers = #tpu.dot_dimension_numbers<[1], [0], [0], [1], [0, 0, 1, 1], [], []>} : vector<8x16xf32>, vector<16x16xf32>, vector<8x16xf32> -> vector<8x16xf32>
    %213 = arith.maximumf %211, %212 : vector<8x16xf32>
    %cst_183 = arith.constant dense<0.000000e+00> : vector<8x8xf32>
    %214 = tpu.matmul %213, %20, %cst_183 {dimension_numbers = #tpu.dot_dimension_numbers<[1], [0], [0], [1], [0, 0, 1, 1], [], []>} : vector<8x16xf32>, vector<16x8xf32>, vector<8x8xf32> -> vector<8x8xf32>
    %cst_184 = arith.constant dense<0.000000e+00> : vector<8x8xf32>
    %215 = tpu.matmul %213, %27, %cst_184 {dimension_numbers = #tpu.dot_dimension_numbers<[1], [0], [0], [1], [0, 0, 1, 1], [], []>} : vector<8x16xf32>, vector<16x8xf32>, vector<8x8xf32> -> vector<8x8xf32>
    %216 = arith.maximumf %214, %215 : vector<8x8xf32>
    %c0_185 = arith.constant 0 : index
    %c5_186 = arith.constant 5 : index
    %c0_187 = arith.constant 0 : index
    %c0_188 = arith.constant 0 : index
    %217 = vector.load %arg5[%c0_185, %c5_186, %c0_187, %c0_188] : memref<1x8x8x8xf32, #tpu.memory_space<vmem>>, vector<1x1x8x8xf32>
    %218 = vector.shape_cast %217 : vector<1x1x8x8xf32> to vector<8x8xf32>
    %219 = vector.shape_cast %216 : vector<8x8xf32> to vector<1x1x8x8xf32>
    tpu.vector_store %arg5[%c0_185, %c5_186, %c0_187, %c0_188], %219 {strides = array<i32>} : memref<1x8x8x8xf32, #tpu.memory_space<vmem>>, vector<1x1x8x8xf32>,
    %c6 = arith.constant 6 : index
    %c0_189 = arith.constant 0 : index
    %220 = memref.load %arg3[%c6, %c0_189] : memref<8x4xf32, #tpu.memory_space<smem>>
    %c0_190 = arith.constant 0 : index
    %c0_191 = arith.constant 0 : index
    %c0_192 = arith.constant 0 : index
    %c0_193 = arith.constant 0 : index
    %221 = vector.load %arg4[%c0_190, %c0_191, %c0_192, %c0_193] : memref<1x4x16x16xf32, #tpu.memory_space<vmem>>, vector<1x1x16x16xf32>
    %222 = vector.shape_cast %221 : vector<1x1x16x16xf32> to vector<16x16xf32>
    %223 = vector.broadcast %220 : f32 to vector<16x16xf32>
    %224 = arith.mulf %223, %222 : vector<16x16xf32>
    %c6_194 = arith.constant 6 : index
    %c1_195 = arith.constant 1 : index
    %225 = memref.load %arg3[%c6_194, %c1_195] : memref<8x4xf32, #tpu.memory_space<smem>>
    %c0_196 = arith.constant 0 : index
    %c1_197 = arith.constant 1 : index
    %c0_198 = arith.constant 0 : index
    %c0_199 = arith.constant 0 : index
    %226 = vector.load %arg4[%c0_196, %c1_197, %c0_198, %c0_199] : memref<1x4x16x16xf32, #tpu.memory_space<vmem>>, vector<1x1x16x16xf32>
    %227 = vector.shape_cast %226 : vector<1x1x16x16xf32> to vector<16x16xf32>
    %228 = vector.broadcast %225 : f32 to vector<16x16xf32>
    %229 = arith.mulf %228, %227 : vector<16x16xf32>
    %230 = arith.addf %224, %229 : vector<16x16xf32>
    %c6_200 = arith.constant 6 : index
    %c2_201 = arith.constant 2 : index
    %231 = memref.load %arg3[%c6_200, %c2_201] : memref<8x4xf32, #tpu.memory_space<smem>>
    %c0_202 = arith.constant 0 : index
    %c2_203 = arith.constant 2 : index
    %c0_204 = arith.constant 0 : index
    %c0_205 = arith.constant 0 : index
    %232 = vector.load %arg4[%c0_202, %c2_203, %c0_204, %c0_205] : memref<1x4x16x16xf32, #tpu.memory_space<vmem>>, vector<1x1x16x16xf32>
    %233 = vector.shape_cast %232 : vector<1x1x16x16xf32> to vector<16x16xf32>
    %234 = vector.broadcast %231 : f32 to vector<16x16xf32>
    %235 = arith.mulf %234, %233 : vector<16x16xf32>
    %236 = arith.addf %230, %235 : vector<16x16xf32>
    %c6_206 = arith.constant 6 : index
    %c3_207 = arith.constant 3 : index
    %237 = memref.load %arg3[%c6_206, %c3_207] : memref<8x4xf32, #tpu.memory_space<smem>>
    %c0_208 = arith.constant 0 : index
    %c3_209 = arith.constant 3 : index
    %c0_210 = arith.constant 0 : index
    %c0_211 = arith.constant 0 : index
    %238 = vector.load %arg4[%c0_208, %c3_209, %c0_210, %c0_211] : memref<1x4x16x16xf32, #tpu.memory_space<vmem>>, vector<1x1x16x16xf32>
    %239 = vector.shape_cast %238 : vector<1x1x16x16xf32> to vector<16x16xf32>
    %240 = vector.broadcast %237 : f32 to vector<16x16xf32>
    %241 = arith.mulf %240, %239 : vector<16x16xf32>
    %242 = arith.addf %236, %241 : vector<16x16xf32>
    %cst_212 = arith.constant dense<0.000000e+00> : vector<8x16xf32>
    %243 = tpu.matmul %6, %242, %cst_212 {dimension_numbers = #tpu.dot_dimension_numbers<[1], [0], [0], [1], [0, 0, 1, 1], [], []>} : vector<8x16xf32>, vector<16x16xf32>, vector<8x16xf32> -> vector<8x16xf32>
    %cst_213 = arith.constant dense<0.000000e+00> : vector<8x16xf32>
    %244 = tpu.matmul %13, %242, %cst_213 {dimension_numbers = #tpu.dot_dimension_numbers<[1], [0], [0], [1], [0, 0, 1, 1], [], []>} : vector<8x16xf32>, vector<16x16xf32>, vector<8x16xf32> -> vector<8x16xf32>
    %245 = arith.maximumf %243, %244 : vector<8x16xf32>
    %cst_214 = arith.constant dense<0.000000e+00> : vector<8x8xf32>
    %246 = tpu.matmul %245, %20, %cst_214 {dimension_numbers = #tpu.dot_dimension_numbers<[1], [0], [0], [1], [0, 0, 1, 1], [], []>} : vector<8x16xf32>, vector<16x8xf32>, vector<8x8xf32> -> vector<8x8xf32>
    %cst_215 = arith.constant dense<0.000000e+00> : vector<8x8xf32>
    %247 = tpu.matmul %245, %27, %cst_215 {dimension_numbers = #tpu.dot_dimension_numbers<[1], [0], [0], [1], [0, 0, 1, 1], [], []>} : vector<8x16xf32>, vector<16x8xf32>, vector<8x8xf32> -> vector<8x8xf32>
    %248 = arith.maximumf %246, %247 : vector<8x8xf32>
    %c0_216 = arith.constant 0 : index
    %c6_217 = arith.constant 6 : index
    %c0_218 = arith.constant 0 : index
    %c0_219 = arith.constant 0 : index
    %249 = vector.load %arg5[%c0_216, %c6_217, %c0_218, %c0_219] : memref<1x8x8x8xf32, #tpu.memory_space<vmem>>, vector<1x1x8x8xf32>
    %250 = vector.shape_cast %249 : vector<1x1x8x8xf32> to vector<8x8xf32>
    %251 = vector.shape_cast %248 : vector<8x8xf32> to vector<1x1x8x8xf32>
    tpu.vector_store %arg5[%c0_216, %c6_217, %c0_218, %c0_219], %251 {strides = array<i32>} : memref<1x8x8x8xf32, #tpu.memory_space<vmem>>, vector<1x1x8x8xf32>,
    %c7 = arith.constant 7 : index
    %c0_220 = arith.constant 0 : index
    %252 = memref.load %arg3[%c7, %c0_220] : memref<8x4xf32, #tpu.memory_space<smem>>
    %c0_221 = arith.constant 0 : index
    %c0_222 = arith.constant 0 : index
    %c0_223 = arith.constant 0 : index
    %c0_224 = arith.constant 0 : index
    %253 = vector.load %arg4[%c0_221, %c0_222, %c0_223, %c0_224] : memref<1x4x16x16xf32, #tpu.memory_space<vmem>>, vector<1x1x16x16xf32>
    %254 = vector.shape_cast %253 : vector<1x1x16x16xf32> to vector<16x16xf32>
    %255 = vector.broadcast %252 : f32 to vector<16x16xf32>
    %256 = arith.mulf %255, %254 : vector<16x16xf32>
    %c7_225 = arith.constant 7 : index
    %c1_226 = arith.constant 1 : index
    %257 = memref.load %arg3[%c7_225, %c1_226] : memref<8x4xf32, #tpu.memory_space<smem>>
    %c0_227 = arith.constant 0 : index
    %c1_228 = arith.constant 1 : index
    %c0_229 = arith.constant 0 : index
    %c0_230 = arith.constant 0 : index
    %258 = vector.load %arg4[%c0_227, %c1_228, %c0_229, %c0_230] : memref<1x4x16x16xf32, #tpu.memory_space<vmem>>, vector<1x1x16x16xf32>
    %259 = vector.shape_cast %258 : vector<1x1x16x16xf32> to vector<16x16xf32>
    %260 = vector.broadcast %257 : f32 to vector<16x16xf32>
    %261 = arith.mulf %260, %259 : vector<16x16xf32>
    %262 = arith.addf %256, %261 : vector<16x16xf32>
    %c7_231 = arith.constant 7 : index
    %c2_232 = arith.constant 2 : index
    %263 = memref.load %arg3[%c7_231, %c2_232] : memref<8x4xf32, #tpu.memory_space<smem>>
    %c0_233 = arith.constant 0 : index
    %c2_234 = arith.constant 2 : index
    %c0_235 = arith.constant 0 : index
    %c0_236 = arith.constant 0 : index
    %264 = vector.load %arg4[%c0_233, %c2_234, %c0_235, %c0_236] : memref<1x4x16x16xf32, #tpu.memory_space<vmem>>, vector<1x1x16x16xf32>
    %265 = vector.shape_cast %264 : vector<1x1x16x16xf32> to vector<16x16xf32>
    %266 = vector.broadcast %263 : f32 to vector<16x16xf32>
    %267 = arith.mulf %266, %265 : vector<16x16xf32>
    %268 = arith.addf %262, %267 : vector<16x16xf32>
    %c7_237 = arith.constant 7 : index
    %c3_238 = arith.constant 3 : index
    %269 = memref.load %arg3[%c7_237, %c3_238] : memref<8x4xf32, #tpu.memory_space<smem>>
    %c0_239 = arith.constant 0 : index
    %c3_240 = arith.constant 3 : index
    %c0_241 = arith.constant 0 : index
    %c0_242 = arith.constant 0 : index
    %270 = vector.load %arg4[%c0_239, %c3_240, %c0_241, %c0_242] : memref<1x4x16x16xf32, #tpu.memory_space<vmem>>, vector<1x1x16x16xf32>
    %271 = vector.shape_cast %270 : vector<1x1x16x16xf32> to vector<16x16xf32>
    %272 = vector.broadcast %269 : f32 to vector<16x16xf32>
    %273 = arith.mulf %272, %271 : vector<16x16xf32>
    %274 = arith.addf %268, %273 : vector<16x16xf32>
    %cst_243 = arith.constant dense<0.000000e+00> : vector<8x16xf32>
    %275 = tpu.matmul %6, %274, %cst_243 {dimension_numbers = #tpu.dot_dimension_numbers<[1], [0], [0], [1], [0, 0, 1, 1], [], []>} : vector<8x16xf32>, vector<16x16xf32>, vector<8x16xf32> -> vector<8x16xf32>
    %cst_244 = arith.constant dense<0.000000e+00> : vector<8x16xf32>
    %276 = tpu.matmul %13, %274, %cst_244 {dimension_numbers = #tpu.dot_dimension_numbers<[1], [0], [0], [1], [0, 0, 1, 1], [], []>} : vector<8x16xf32>, vector<16x16xf32>, vector<8x16xf32> -> vector<8x16xf32>
    %277 = arith.maximumf %275, %276 : vector<8x16xf32>
    %cst_245 = arith.constant dense<0.000000e+00> : vector<8x8xf32>
    %278 = tpu.matmul %277, %20, %cst_245 {dimension_numbers = #tpu.dot_dimension_numbers<[1], [0], [0], [1], [0, 0, 1, 1], [], []>} : vector<8x16xf32>, vector<16x8xf32>, vector<8x8xf32> -> vector<8x8xf32>
    %cst_246 = arith.constant dense<0.000000e+00> : vector<8x8xf32>
    %279 = tpu.matmul %277, %27, %cst_246 {dimension_numbers = #tpu.dot_dimension_numbers<[1], [0], [0], [1], [0, 0, 1, 1], [], []>} : vector<8x16xf32>, vector<16x8xf32>, vector<8x8xf32> -> vector<8x8xf32>
    %280 = arith.maximumf %278, %279 : vector<8x8xf32>
    %c0_247 = arith.constant 0 : index
    %c7_248 = arith.constant 7 : index
    %c0_249 = arith.constant 0 : index
    %c0_250 = arith.constant 0 : index
    %281 = vector.load %arg5[%c0_247, %c7_248, %c0_249, %c0_250] : memref<1x8x8x8xf32, #tpu.memory_space<vmem>>, vector<1x1x8x8xf32>
    %282 = vector.shape_cast %281 : vector<1x1x8x8xf32> to vector<8x8xf32>
    %283 = vector.shape_cast %280 : vector<8x8xf32> to vector<1x1x8x8xf32>
    tpu.vector_store %arg5[%c0_247, %c7_248, %c0_249, %c0_250], %283 {strides = array<i32>} : memref<1x8x8x8xf32, #tpu.memory_space<vmem>>, vector<1x1x8x8xf32>,
    return
  }
  func.func @transform_0(%arg0: i32, %arg1: i32, %arg2: i32) -> (i32, i32) {
    %c0_i32 = arith.constant 0 : i32
    %c0_i32_0 = arith.constant 0 : i32
    %c0_i32_1 = arith.constant 0 : i32
    return %c0_i32, %c0_i32_0 : i32, i32
  }
  func.func @transform_1(%arg0: i32, %arg1: i32, %arg2: i32) -> (i32, i32, i32, i32) {
    %c0_i32 = arith.constant 0 : i32
    %c0_i32_0 = arith.constant 0 : i32
    return %arg0, %c0_i32, %arg1, %arg2 : i32, i32, i32, i32
  }
  func.func @transform_2(%arg0: i32, %arg1: i32, %arg2: i32) -> (i32, i32, i32, i32) {
    %c0_i32 = arith.constant 0 : i32
    %c0_i32_0 = arith.constant 0 : i32
    return %arg0, %c0_i32, %arg1, %arg2 : i32, i32, i32, i32
  }
}

</mosaic_0001>

<bundles_post_ra>
// kernel: tpu_custom_call.1
= control target key start
LH: loop header
LB: loop body
LE: loop exit
PB: predicated region body
PF: predicated region fallthrough
CT: control target
= control target key end

     0   :  { %7 = vsyncpa [#allocation5], 0  ;;  %s2237_s0 = inlined_call_operand.vmem [shape: f32[8,4], index: 0, kind: input, shape index: {}]   ;;  %s2238_s1 = inlined_call_operand.hbm [shape: f32[2,4,16,16], index: 1, kind: input, shape index: {}]   ;;  %s2239_s2 = inlined_call_operand.hbm [shape: f32[2,8,8,8], index: 2, kind: output, shape index: {}]  }
   0x1   :  { %8 = vsyncpa [#allocation3], 0 }
   0x2   :  { %10 = vsyncpa [#allocation3 + $0x1], 0 }
   0x3   :  { %11 = vsyncpa [#allocation4], 0 }
   0x4   :  { %13 = vsyncpa [#allocation4 + $0x1], 0  ;;  %s1712_s9 = smov 0   ;;  %s1714_s10 = smov 0  }
   0x5   :  { %s1716_s11 = smov 0   ;;  %s1718_s12 = smov 0  }
   0x6   :  { %s1720_s13 = smov 0   ;;  %s1722_s14 = smov 0  }
   0x7 LB: > { %s1303_s15 = sadd.s32 4294967295, %s1688_s14   ;;  %s1304_s16 = sadd.s32 4294967294, %s1688_s14   ;;  %s1688_s14 = sphi %s1722_s14, %s19_s14   ;;  %s1684_s13 = sphi %s1720_s13, %s2261_s13   ;;  %s1680_s12 = sphi %s1718_s12, %s2260_s12   ;;  %s1676_s11 = sphi %s1716_s11, %s2259_s11   ;;  %s1672_s10 = sphi %s1714_s10, %s2258_s10   ;;  %s1668_s9 = sphi %s1712_s9, %s2257_s9  }
   0x8   : > { %s70_s17 = sadd.s32 1, %s1676_s11  ;;  %p77_p0 = scmp.ne.s32.totalorder %s1676_s11, %s1672_s10 }
   0x9   : > { %p78_p1 = scmp.eq.s32.totalorder %s1688_s14, 0  ;;  %p83_p2 = scmp.ne.s32.totalorder %s1672_s10, %s1668_s9 }
   0xa   : > { %p1750_p3 = scmp.eq.s32.totalorder %s1303_s15, 0  ;;  %p111_p4 = scmp.eq.s32.totalorder %s1303_s15, 1 }
   0xb   : > { %p1754_p5 = por %p78_p1, %p77_p0  ;;  %p117_p6 = scmp.eq.s32.totalorder %s1304_s16, 1 }
   0xc   : > { %p1760_p7 = por %p1750_p3, %p83_p2  ;;  %p1764_p8 = por %p111_p4, %p77_p0 }
   0xd   : > { %p1768_p9 = por %p117_p6, %p83_p2  ;;  %p1305_p10 = scmp.ge.s32.totalorder %s1688_s14, 1 }
   0xe   : > { %p124_p11 = scmp.lt.s32.totalorder %s1688_s14, 3  ;;  %s136_s25 = sshll.u32 %s2237_s0, 4  ;;  %s137_s25 = int_to_ptr.vmem [resolvable:$true] %s136_s25 }
   0xf   : > { %p1307_p13 = scmp.ge.s32.totalorder %s1688_s14, 2  ;;  %p1499_p0 = scmp.lt.s32.totalorder %s1688_s14, 2 }
  0x10   : > { %p1777_p12 = pnand %p1305_p10, %p124_p11  ;;  %s38_s28 = sadd.s32 1, %s1684_s13 }
  0x11   : > { %p1787_p2 = pnand %p1499_p0, %p1754_p5  ;;  %p40_p6 = scmp.ge.s32.totalorder %s38_s28, 2 }
  0x12   : > { %p1486_p1 = pneg %p1777_p12  ;;  %s147_s29 = sand.u32 1, %s1676_s11  }
  0x13   : > { %s1690_s30 = smov [#allocation2]   ;;  %s2263_s28 = smov (%p40_p6, %s38_s28), 0 }
  0x14   : > { %p1487_p4 = pnand %p1486_p1, %p1750_p3  ;;  %s1308_s3 = sshll.u32 %s147_s29, 6 }
  0x15   : > { %s63_s4 = ssub.s32 %s1684_s13, %s2263_s28  ;;  %s1476_s5 = sshll.u32 %s1684_s13, 6 }
  0x16   : > { %1489 = dma.vmem_to_smem (!%p1487_p4), %s137_s25, 128, %s1690_s30, [#allocation5]  }
  0x17   : > { %p68_p10 = scmp.eq.s32.totalorder %s63_s4, 0  ;;  %s159_s8 = scalar_lea.hbm %s2238_s1, %s1476_s5 }
  0x18   : > { %s151_s15 = scalar_lea.vmem [#allocation6], %s1308_s3  ;;  %s160_s23 = sshll.u32 %s159_s8, 4  ;;  %s161_s23 = int_to_ptr.hbm [resolvable:$true] %s160_s23 }
  0x19   : > { %s162_s16 = sshll.u32 %s151_s15, 4  ;;  %s148_s24 = scalar_lea.sflag [#allocation3], %s147_s29  ;;  %s163_s16 = int_to_ptr.vmem [resolvable:$true] %s162_s16 }
  0x1a   : > { %s1806_s19 = scalar_select %p68_p10, %s1676_s11, %s70_s17  }
  0x1b   : > { %s1691_s25 = smov 128   ;;  %s1692_s30 = smov 8  }
  0x1c   : > { %1493 = dma.hbm_to_vmem [thread:$0]  (!%p1787_p2), %s161_s23, 1024, %s163_s16, %s148_s24, %s1691_s25, %s1691_s25, %s1692_s30  }
  0x1d   : > { %174 = sbr.rel (%p1777_p12) target bundleno = 382 (0x17e), region = 28 }
  0x22   : > { %1655 = dma.done.wait (%p1750_p3), [#allocation5], 128  }
  0x23   : > { %1657 = vsyncadd (%p1750_p3), [#allocation5], 4294967168  ;;  %s1817_s17 = sand.u32 1, %s1672_s10  }
  0x24   : > { %s1313_s29 = sshll.u32 %s1817_s17, 6  ;;  %s182_s3 = scalar_lea.sflag [#allocation3], %s1817_s17 }
  0x25   : > { %s185_s27 = scalar_lea.vmem [#allocation6], %s1313_s29 }
  0x26   : > { %1659 = dma.done.wait (%p1760_p7), %s182_s3, 1024  }
  0x27   : > { %1661 = vsyncadd (%p1760_p7), %s182_s3, 4294966272 }
  0x28   : > { %191 = sfence }
  0x29   : > { %s236_s26 = sld [smem:[#allocation2]]  ;;  %v209_v0 = vlaneseq  ;;  %v1835_v3 = vld [vmem:[%s185_s27 + $0x8] sm:$0xff]  ;;  %v1837_v4 = vld [vmem:[%s185_s27] sm:$0xff]  ;;  %v1842_v6 = vld [vmem:[%s185_s27 + $0x18] sm:$0xff]  ;;  %vm269_vm2 = vcmask 130048   ;;  %v1693_v28 = vmov 0.0  }
  0x2a   : > { %s1321_s18 = sld [smem:[#allocation2 + $0x1]]  ;;  %v1844_v7 = vld [vmem:[%s185_s27 + $0x10] sm:$0xff]  ;;  %v1848_v9 = vld [vmem:[%s185_s27 + $0x28] sm:$0xff]  ;;  %v1850_v10 = vld [vmem:[%s185_s27 + $0x20] sm:$0xff]  ;;  %vm361_vm7 = vcmask 64512  }
  0x2b   : > { %s1827_s4 = sld [smem:[#allocation2 + $0x2]]  ;;  %v1829_v1 = vshrl.u32 %v209_v0, 7  ;;  %v1833_v2 = vand.u32 127, %v209_v0  ;;  %v1855_v14 = vld [vmem:[%s185_s27 + $0x38] sm:$0xff]  ;;  %v1858_v16 = vld [vmem:[%s185_s27 + $0x30] sm:$0xff] }
  0x2c   : > { %s1831_s5 = sld [smem:[#allocation2 + $0x3]] }
  0x2d   : > { %v213_v5 = vmul.u32 2, %v1829_v1  ;;  %s1840_s20 = sld [smem:[#allocation2 + $0x80]] }
  0x2e   : > { %s1846_s6 = sld [smem:[#allocation2 + $0x81]] }
  0x2f   : > { %v239_v8 = vstv %s236_s26  ;;  %v217_v11 = vadd.s32 1, %v213_v5  ;;  %s1852_s7 = sld [smem:[#allocation2 + $0x82]]  ;;  %vm1861_vm0 = vcmp.eq.s32.totalorder %v1833_v2, %v213_v5 }
  0x30   : > { %v241_v12 = vmul.f32 %v239_v8, %v1835_v3  ;;  %v246_v13 = vstv %s1321_s18  ;;  %v240_v15 = vmul.f32 %v239_v8, %v1837_v4  ;;  %s1865_s8 = sld [smem:[#allocation2 + $0x83]]  ;;  %v1884_v29 = vsel %vm1861_vm0, 1.0, %v1693_v28 }
  0x31   : > { %v248_v18 = vmul.f32 %v1842_v6, %v246_v13  ;;  %v255_v19 = vstv %s1827_s4  ;;  %v247_v20 = vmul.f32 %v1844_v7, %v246_v13  ;;  %vm218_vm1 = vcmp.eq.s32.totalorder %v1833_v2, %v217_v11  ;;  %s1871_s15 = sld [smem:[#allocation2 + $0x100]] }
  0x32   : > { %v257_v21 = vmul.f32 %v1848_v9, %v255_v19  ;;  %v264_v22 = vstv %s1831_s5  ;;  %v256_v23 = vmul.f32 %v1850_v10, %v255_v19  ;;  %s1876_s16 = sld [smem:[#allocation2 + $0x101]]  ;;  %v1886_v30 = vsel %vm218_vm1, 1.0, %v1693_v28 }
  0x33   : > { %v250_v24 = vadd.f32 %v248_v18, %v241_v12  ;;  %v266_v25 = vmul.f32 %v1855_v14, %v264_v22  ;;  %v249_v26 = vadd.f32 %v247_v20, %v240_v15  ;;  %v265_v27 = vmul.f32 %v1858_v16, %v264_v22  ;;  %s1880_s23 = sld [smem:[#allocation2 + $0x102]] }
  0x34   : > { %v366_v31 = vstv %s1840_s20  ;;  %v372_v32 = vstv %s1846_s6  ;;  %s1890_s24 = sld [smem:[#allocation2 + $0x103]] }
  0x35   : > { %v259_v33 = vadd.f32 %v257_v21, %v250_v24  ;;  %v258_v34 = vadd.f32 %v256_v23, %v249_v26  ;;  %v368_v35 = vmul.f32 %v366_v31, %v1835_v3  ;;  %v374_v36 = vmul.f32 %v1842_v6, %v372_v32  ;;  %s1894_s25 = sld [smem:[#allocation2 + $0x180]] }
  0x36   : > { %v380_v37 = vstv %s1852_s7  ;;  %v388_v38 = vstv %s1865_s8  ;;  %v367_v39 = vmul.f32 %v366_v31, %v1837_v4  ;;  %v373_v40 = vmul.f32 %v1844_v7, %v372_v32  ;;  %s1900_s30 = sld [smem:[#allocation2 + $0x181]] }
  0x37   : > { %v268_v41 = vadd.f32 %v266_v25, %v259_v33  ;;  %v267_v42 = vadd.f32 %v265_v27, %v258_v34  ;;  %v376_v43 = vadd.f32 %v374_v36, %v368_v35  ;;  %v382_v44 = vmul.f32 %v1848_v9, %v380_v37  ;;  %s1903_s3 = sld [smem:[#allocation2 + $0x182]] }
  0x38   : > { %v390_v45 = vmul.f32 %v1855_v14, %v388_v38  ;;  %v375_v46 = vadd.f32 %v373_v40, %v367_v39  ;;  %v381_v47 = vmul.f32 %v1850_v10, %v380_v37  ;;  %v389_v48 = vmul.f32 %v1858_v16, %v388_v38  ;;  %s1908_s27 = sld [smem:[#allocation2 + $0x183]] }
  0x39   : > { %287 = vmatpush.msra.mxu0 %v268_v41  ;;  %310 = vmatpush.msra.mxu1 %v268_v41  ;;  %v384_v49 = vadd.f32 %v382_v44, %v376_v43  ;;  %v483_v50 = vstv %s1871_s15  ;;  %v489_v51 = vstv %s1876_s16  ;;  %v497_v52 = vstv %s1880_s23  ;;  %s1913_s26 = sld [smem:[#allocation2 + $0x200]] }
  0x3a   : > { %v383_v53 = vadd.f32 %v381_v47, %v375_v46  ;;  %v485_v54 = vmul.f32 %v483_v50, %v1835_v3  ;;  %v491_v55 = vmul.f32 %v1842_v6, %v489_v51  ;;  %v499_v56 = vmul.f32 %v1848_v9, %v497_v52  ;;  %s1918_s18 = sld [smem:[#allocation2 + $0x201]] }
  0x3b   : > { %288 = vmatpush.msra.mxu0 %v267_v42  ;;  %311 = vmatpush.msra.mxu1 %v267_v42  ;;  %v392_v57 = vadd.f32 %v390_v45, %v384_v49  ;;  %v505_v58 = vstv %s1890_s24  ;;  %v484_v59 = vmul.f32 %v483_v50, %v1837_v4  ;;  %v490_v60 = vmul.f32 %v1844_v7, %v489_v51  ;;  %s1923_s4 = sld [smem:[#allocation2 + $0x202]] }
  0x3c   : > { %1330 = vmatmul.msk.f32.vlgmr.msra.gmra.mxu0 %vm269_vm2, %v1884_v29  ;;  %1331 = vmatmul.msk.f32.vlgmr.msra.gmra.mxu1 %vm269_vm2, %v1886_v30  ;;  %v391_v61 = vadd.f32 %v389_v48, %v383_v53  ;;  %v493_v62 = vadd.f32 %v491_v55, %v485_v54  ;;  %v507_v63 = vmul.f32 %v1855_v14, %v505_v58  ;;  %v600_v0 = vstv %s1894_s25  ;;  %s1931_s5 = sld [smem:[#allocation2 + $0x203]] }
  0x3d   : > { %407 = vmatpush.msrb.mxu0 %v392_v57  ;;  %427 = vmatpush.msrb.mxu1 %v392_v57  ;;  %v492_v5 = vadd.f32 %v490_v60, %v484_v59  ;;  %v498_v8 = vmul.f32 %v1850_v10, %v497_v52  ;;  %v506_v11 = vmul.f32 %v1858_v16, %v505_v58  ;;  %v606_v12 = vstv %s1900_s30  ;;  %s1936_s20 = sld [smem:[#allocation2 + $0x280]] }
  0x3e   : > { %v501_v13 = vadd.f32 %v499_v56, %v493_v62  ;;  %v602_v15 = vmul.f32 %v600_v0, %v1835_v3  ;;  %v608_v17 = vmul.f32 %v1842_v6, %v606_v12  ;;  %v614_v18 = vstv %s1903_s3  ;;  %s1941_s6 = sld [smem:[#allocation2 + $0x281]] }
  0x3f   : > { %408 = vmatpush.msrb.mxu0 %v391_v61  ;;  %428 = vmatpush.msrb.mxu1 %v391_v61  ;;  %v500_v19 = vadd.f32 %v498_v8, %v492_v5  ;;  %v616_v20 = vmul.f32 %v1848_v9, %v614_v18  ;;  %v622_v21 = vstv %s1908_s27  ;;  %v601_v22 = vmul.f32 %v600_v0, %v1837_v4  ;;  %s1946_s7 = sld [smem:[#allocation2 + $0x282]] }
  0x40   : > { %v509_v23 = vadd.f32 %v507_v63, %v501_v13  ;;  %v610_v24 = vadd.f32 %v608_v17, %v602_v15  ;;  %v624_v25 = vmul.f32 %v1855_v14, %v622_v21  ;;  %v607_v26 = vmul.f32 %v1844_v7, %v606_v12  ;;  %s1953_s8 = sld [smem:[#allocation2 + $0x283]] }
  0x41   : > { %v508_v27 = vadd.f32 %v506_v11, %v500_v19  ;;  %v615_v28 = vmul.f32 %v1850_v10, %v614_v18  ;;  %v623_v31 = vmul.f32 %v1858_v16, %v622_v21  ;;  %v717_v32 = vstv %s1913_s26  ;;  %s1957_s15 = sld [smem:[#allocation2 + $0x300]]  ;;  %s2180_s26 = scalar_lea.vmem [#allocation7], %s1313_s29 }
  0x42   : > { %524 = vmatpush.msra.mxu0 %v509_v23  ;;  %544 = vmatpush.msra.mxu1 %v509_v23  ;;  %v618_v33 = vadd.f32 %v616_v20, %v610_v24  ;;  %v609_v34 = vadd.f32 %v607_v26, %v601_v22  ;;  %v719_v35 = vmul.f32 %v717_v32, %v1835_v3  ;;  %v723_v36 = vstv %s1918_s18  ;;  %s1963_s16 = sld [smem:[#allocation2 + $0x301]]  ;;  %s1477_s29 = sshll.u32 %s1680_s12, 6 }
  0x43   : > { %v725_v37 = vmul.f32 %v1842_v6, %v723_v36  ;;  %v731_v38 = vstv %s1923_s4  ;;  %v739_v39 = vstv %s1931_s5  ;;  %v718_v40 = vmul.f32 %v717_v32, %v1837_v4  ;;  %s1977_s23 = sld [smem:[#allocation2 + $0x302]]  ;;  %s1196_s5 = scalar_lea.hbm %s2239_s2, %s1477_s29 }
  0x44   : > { %1348 = vmatmul.msk.f32.vlgmr.msrb.gmra.mxu0 %vm269_vm2, %v1884_v29  ;;  %1349 = vmatmul.msk.f32.vlgmr.msrb.gmra.mxu1 %vm269_vm2, %v1886_v30  ;;  %v626_v41 = vadd.f32 %v624_v25, %v618_v33  ;;  %v617_v42 = vadd.f32 %v615_v28, %v609_v34  ;;  %v733_v43 = vmul.f32 %v1848_v9, %v731_v38  ;;  %v834_v44 = vstv %s1936_s20  ;;  %s1984_s24 = sld [smem:[#allocation2 + $0x303]]  ;;  %s1197_s20 = sshll.u32 %s2180_s26, 4  ;;  %s1198_s20 = int_to_ptr.vmem [resolvable:$true] %s1197_s20 }
  0x45   : > { %525 = vmatpush.msra.mxu0 %v508_v27  ;;  %545 = vmatpush.msra.mxu1 %v508_v27  ;;  %v727_v45 = vadd.f32 %v725_v37, %v719_v35  ;;  %v741_v46 = vmul.f32 %v1855_v14, %v739_v39  ;;  %v724_v47 = vmul.f32 %v1844_v7, %v723_v36  ;;  %v840_v48 = vstv %s1941_s6  ;;  %s1987_s25 = sld [smem:[#allocation2 + $0x380]]  ;;  %s1199_s6 = sshll.u32 %s1196_s5, 4  ;;  %s1200_s6 = int_to_ptr.hbm [resolvable:$true] %s1199_s6 }
  0x46   : > { %v625_v49 = vadd.f32 %v623_v31, %v617_v42  ;;  %v732_v50 = vmul.f32 %v1850_v10, %v731_v38  ;;  %v740_v51 = vmul.f32 %v1858_v16, %v739_v39  ;;  %v848_v52 = vstv %s1946_s7  ;;  %s1990_s30 = sld [smem:[#allocation2 + $0x381]]  ;;  %s1183_s12 = scalar_lea.sflag [#allocation4], %s1817_s17 }
  0x47   : > { %641 = vmatpush.msrb.mxu0 %v626_v41  ;;  %661 = vmatpush.msrb.mxu1 %v626_v41  ;;  %v735_v53 = vadd.f32 %v733_v43, %v727_v45  ;;  %v726_v54 = vadd.f32 %v724_v47, %v718_v40  ;;  %v836_v55 = vmul.f32 %v834_v44, %v1835_v3  ;;  %v856_v63 = vstv %s1953_s8  ;;  %s2003_s3 = sld [smem:[#allocation2 + $0x382]]  ;;  %s1616_s7 = sshra.s32 %s1200_s6, 4  ;;  %s1617_s7 = int_to_ptr.hbm [resolvable:$true] %s1616_s7 }
  0x48   : > { %v842_v56 = vmul.f32 %v1842_v6, %v840_v48  ;;  %v850_v57 = vmul.f32 %v1848_v9, %v848_v52  ;;  %v835_v58 = vmul.f32 %v834_v44, %v1837_v4  ;;  %v841_v59 = vmul.f32 %v1844_v7, %v840_v48  ;;  %s2011_s27 = sld [smem:[#allocation2 + $0x383]]  ;;  %s1618_s8 = scalar_lea.hbm %s1617_s7, 64 }
  0x49   : > { %642 = vmatpush.msrb.mxu0 %v625_v49  ;;  %662 = vmatpush.msrb.mxu1 %v625_v49  ;;  %v743_v60 = vadd.f32 %v741_v46, %v735_v53  ;;  %v734_v61 = vadd.f32 %v732_v50, %v726_v54  ;;  %v951_v0 = vstv %s1957_s15  ;;  %v849_v11 = vmul.f32 %v1850_v10, %v848_v52  ;;  %p1619_p3 = scmp.ne.s32.totalorder %s1617_s7, %s1618_s8  ;;  %p1623_p11 = scmp.lt.s32.totalorder %s1617_s7, %s2239_s2 }
  0x4a   : > { %v844_v62 = vadd.f32 %v842_v56, %v836_v55  ;;  %v843_v8 = vadd.f32 %v841_v59, %v835_v58  ;;  %v957_v12 = vstv %s1963_s16  ;;  %v858_v13 = vmul.f32 %v1855_v14, %v856_v63 }
  0x4b   : > { %v742_v5 = vadd.f32 %v740_v51, %v734_v61  ;;  %v953_v17 = vmul.f32 %v951_v0, %v1835_v3  ;;  %v959_v18 = vmul.f32 %v1842_v6, %v957_v12  ;;  %v857_v19 = vmul.f32 %v1858_v16, %v856_v63  ;;  %p1620_p5 = pnand %p1619_p3, %p1764_p8 }
  0x4c   : > { %1367 = vmatmul.msk.f32.vlgmr.msra.gmra.mxu0 %vm269_vm2, %v1884_v29  ;;  %1368 = vmatmul.msk.f32.vlgmr.msra.gmra.mxu1 %vm269_vm2, %v1886_v30  ;;  %v852_v15 = vadd.f32 %v850_v57, %v844_v62  ;;  %v965_v20 = vstv %s1977_s23  ;;  %v851_v21 = vadd.f32 %v849_v11, %v843_v8  ;;  %v952_v22 = vmul.f32 %v951_v0, %v1837_v4  ;;  %s1622_s23 = scalar_lea.hbm %s2239_s2, 128 }
  0x4d   : > { %758 = vmatpush.msra.mxu0 %v743_v60  ;;  %778 = vmatpush.msra.mxu1 %v743_v60  ;;  %v958_v23 = vmul.f32 %v1844_v7, %v957_v12  ;;  %v961_v25 = vadd.f32 %v959_v18, %v953_v17  ;;  %v967_v26 = vmul.f32 %v1848_v9, %v965_v20  ;;  %v973_v27 = vstv %s1984_s24  ;;  %p1621_p7 = pneg %p1620_p5  ;;  %p1624_p12 = scmp.lt.s32.totalorder %s1622_s23, %s1618_s8 }
  0x4e   : > { %v860_v24 = vadd.f32 %v858_v13, %v852_v15  ;;  %v1068_v28 = vstv %s1987_s25  ;;  %v1074_v31 = vstv %s1990_s30  ;;  %v859_v32 = vadd.f32 %v857_v19, %v851_v21 }
  0x4f   : > { %759 = vmatpush.msra.mxu0 %v742_v5  ;;  %779 = vmatpush.msra.mxu1 %v742_v5  ;;  %v960_v33 = vadd.f32 %v958_v23, %v952_v22  ;;  %v966_v34 = vmul.f32 %v1850_v10, %v965_v20  ;;  %v975_v35 = vmul.f32 %v1855_v14, %v973_v27  ;;  %v1082_v40 = vstv %s2003_s3  ;;  %p1625_p0 = por %p1624_p12, %p1623_p11 }
  0x50   : > { %v969_v36 = vadd.f32 %v967_v26, %v961_v25  ;;  %v1070_v37 = vmul.f32 %v1068_v28, %v1835_v3  ;;  %v1076_v38 = vmul.f32 %v1842_v6, %v1074_v31  ;;  %v974_v39 = vmul.f32 %v1858_v16, %v973_v27 }
  0x51   : > { %v968_v41 = vadd.f32 %v966_v34, %v960_v33  ;;  %v1069_v42 = vmul.f32 %v1068_v28, %v1837_v4  ;;  %v1075_v43 = vmul.f32 %v1844_v7, %v1074_v31  ;;  %v1084_v46 = vmul.f32 %v1848_v9, %v1082_v40  ;;  %p1626_p1 = pnand %p1625_p0, %p1621_p7 }
  0x52   : > { %v977_v44 = vadd.f32 %v975_v35, %v969_v36  ;;  %v1078_v45 = vadd.f32 %v1076_v38, %v1070_v37  ;;  %v1090_v47 = vstv %s2011_s27  ;;  %v1083_v3 = vmul.f32 %v1850_v10, %v1082_v40 }
  0x53   : > { %v976_v48 = vadd.f32 %v974_v39, %v968_v41  ;;  %v1077_v49 = vadd.f32 %v1075_v43, %v1069_v42  ;;  %v1092_v6 = vmul.f32 %v1855_v14, %v1090_v47  ;;  %v1091_v9 = vmul.f32 %v1858_v16, %v1090_v47 }
  0x54   : > { %1386 = vmatmul.msk.f32.vlgmr.msrb.gmra.mxu0 %vm269_vm2, %v1884_v29  ;;  %1387 = vmatmul.msk.f32.vlgmr.msrb.gmra.mxu1 %vm269_vm2, %v1886_v30  ;;  %v1086_v4 = vadd.f32 %v1084_v46, %v1078_v45  ;;  %v222_v10 = vmul.u32 2, %v1833_v2  ;;  %v221_v14 = vadd.s32 8, %v1829_v1  ;;  %v1694_v54 = vmov 1.0  }
  0x55   : > { %875 = vmatpush.msrb.mxu0 %v860_v24  ;;  %895 = vmatpush.msrb.mxu1 %v860_v24  ;;  %v1085_v7 = vadd.f32 %v1083_v3, %v1077_v49 }
  0x56   : > { %v1094_v50 = vadd.f32 %v1092_v6, %v1086_v4  ;;  %v229_v16 = vadd.s32 1, %v222_v10  ;;  %vm2048_vm3 = vcmp.eq.s32.totalorder %v221_v14, %v222_v10  ;;  %vm2063_vm5 = vcmp.eq.s32.totalorder %v1829_v1, %v222_v10 }
  0x57   : > { %876 = vmatpush.msrb.mxu0 %v859_v32  ;;  %896 = vmatpush.msrb.mxu1 %v859_v32  ;;  %v1093_v51 = vadd.f32 %v1091_v9, %v1085_v7 }
  0x58   : > { %vm2052_vm4 = vcmp.eq.s32.totalorder %v221_v14, %v229_v16  ;;  %1332 = vmatpush.msk.msra.mxu2 %vm2048_vm3, %v1694_v54  ;;  %vm2068_vm6 = vcmp.eq.s32.totalorder %v1829_v1, %v229_v16 }
  0x59   : > { %1335 = vmatpush.msk.msra.mxu3 %vm2052_vm4, %v1694_v54 }
  0x5a   : > { %1333 = vmatpush.msk.msra.mxu2 %vm2063_vm5, %v1694_v54 }
  0x5b   : > { %1336 = vmatpush.msk.msra.mxu3 %vm2068_vm6, %v1694_v54 }
  0x5c   : > { %1405 = vmatmul.msk.f32.vlgmr.msra.gmra.mxu0 %vm269_vm2, %v1884_v29  ;;  %1406 = vmatmul.msk.f32.vlgmr.msra.gmra.mxu1 %vm269_vm2, %v1886_v30 }
  0x5d   : > { %992 = vmatpush.msra.mxu0 %v977_v44  ;;  %1012 = vmatpush.msra.mxu1 %v977_v44 }
  0x5e   : > { %1350 = vmatpush.msk.msrb.mxu2 %vm2048_vm3, %v1694_v54  ;;  %1353 = vmatpush.msk.msrb.mxu3 %vm2052_vm4, %v1694_v54 }
  0x5f   : > { %993 = vmatpush.msra.mxu0 %v976_v48  ;;  %1013 = vmatpush.msra.mxu1 %v976_v48 }
  0x60   : > { %1351 = vmatpush.msk.msrb.mxu2 %vm2063_vm5, %v1694_v54  ;;  %1354 = vmatpush.msk.msrb.mxu3 %vm2068_vm6, %v1694_v54 }
  0x64   : > { %1424 = vmatmul.msk.f32.vlgmr.msrb.gmra.mxu0 %vm269_vm2, %v1884_v29  ;;  %1425 = vmatmul.msk.f32.vlgmr.msrb.gmra.mxu1 %vm269_vm2, %v1886_v30 }
  0x65   : > { %1109 = vmatpush.msrb.mxu0 %v1094_v50  ;;  %1129 = vmatpush.msrb.mxu1 %v1094_v50 }
  0x67   : > { %1110 = vmatpush.msrb.mxu0 %v1093_v51  ;;  %1130 = vmatpush.msrb.mxu1 %v1093_v51 }
  0x6c   : > { %1443 = vmatmul.msk.f32.vlgmr.msra.gmra.mxu0 %vm269_vm2, %v1884_v29  ;;  %1444 = vmatmul.msk.f32.vlgmr.msra.gmra.mxu1 %vm269_vm2, %v1886_v30 }
  0x74   : > { %1462 = vmatmul.msk.f32.vlgmr.msrb.gmra.mxu0 %vm269_vm2, %v1884_v29  ;;  %1463 = vmatmul.msk.f32.vlgmr.msrb.gmra.mxu1 %vm269_vm2, %v1886_v30 }
  0xb9   : > { %v290_v1 = vpop.f32.mrf.mxu0  ;;  %v313_v30 = vpop.f32.mrf.mxu1 }
  0xba   : > { %v316_v55 = vmax.f32 %v290_v1, %v313_v30 }
  0xbc   : > { %1334 = vmatmul.msk.f32.vlgmr.msra.gmra.mxu2 %vm269_vm2, %v316_v55  ;;  %1337 = vmatmul.msk.f32.vlgmr.msra.gmra.mxu3 %vm269_vm2, %v316_v55 }
  0xbd   : > { %1369 = vmatpush.msk.msra.mxu2 %vm2048_vm3, %v1694_v54  ;;  %1372 = vmatpush.msk.msra.mxu3 %vm2052_vm4, %v1694_v54 }
  0xbf   : > { %1370 = vmatpush.msk.msra.mxu2 %vm2063_vm5, %v1694_v54  ;;  %1373 = vmatpush.msk.msra.mxu3 %vm2068_vm6, %v1694_v54 }
  0xc1   : > { %v410_v56 = vpop.f32.mrf.mxu0  ;;  %v430_v57 = vpop.f32.mrf.mxu1 }
  0xc2   : > { %v433_v58 = vmax.f32 %v410_v56, %v430_v57 }
  0xc4   : > { %1352 = vmatmul.msk.f32.vlgmr.msrb.gmra.mxu2 %vm269_vm2, %v433_v58  ;;  %1355 = vmatmul.msk.f32.vlgmr.msrb.gmra.mxu3 %vm269_vm2, %v433_v58 }
  0xc5   : > { %1388 = vmatpush.msk.msrb.mxu2 %vm2048_vm3, %v1694_v54  ;;  %1391 = vmatpush.msk.msrb.mxu3 %vm2052_vm4, %v1694_v54 }
  0xc7   : > { %1389 = vmatpush.msk.msrb.mxu2 %vm2063_vm5, %v1694_v54  ;;  %1392 = vmatpush.msk.msrb.mxu3 %vm2068_vm6, %v1694_v54 }
  0xc9   : > { %v527_v59 = vpop.f32.mrf.mxu0  ;;  %v547_v60 = vpop.f32.mrf.mxu1 }
  0xca   : > { %v550_v61 = vmax.f32 %v527_v59, %v547_v60 }
  0xcc   : > { %1371 = vmatmul.msk.f32.vlgmr.msra.gmra.mxu2 %vm269_vm2, %v550_v61  ;;  %1374 = vmatmul.msk.f32.vlgmr.msra.gmra.mxu3 %vm269_vm2, %v550_v61 }
  0xcd   : > { %1407 = vmatpush.msk.msra.mxu2 %vm2048_vm3, %v1694_v54  ;;  %1410 = vmatpush.msk.msra.mxu3 %vm2052_vm4, %v1694_v54 }
  0xcf   : > { %1408 = vmatpush.msk.msra.mxu2 %vm2063_vm5, %v1694_v54  ;;  %1411 = vmatpush.msk.msra.mxu3 %vm2068_vm6, %v1694_v54 }
  0xd1   : > { %v644_v62 = vpop.f32.mrf.mxu0  ;;  %v664_v63 = vpop.f32.mrf.mxu1 }
  0xd2   : > { %v667_v0 = vmax.f32 %v644_v62, %v664_v63 }
  0xd4   : > { %1390 = vmatmul.msk.f32.vlgmr.msrb.gmra.mxu2 %vm269_vm2, %v667_v0  ;;  %1393 = vmatmul.msk.f32.vlgmr.msrb.gmra.mxu3 %vm269_vm2, %v667_v0 }
  0xd5   : > { %1426 = vmatpush.msk.msrb.mxu2 %vm2048_vm3, %v1694_v54  ;;  %1429 = vmatpush.msk.msrb.mxu3 %vm2052_vm4, %v1694_v54 }
  0xd7   : > { %1427 = vmatpush.msk.msrb.mxu2 %vm2063_vm5, %v1694_v54  ;;  %1430 = vmatpush.msk.msrb.mxu3 %vm2068_vm6, %v1694_v54 }
  0xd9   : > { %v761_v5 = vpop.f32.mrf.mxu0  ;;  %v781_v8 = vpop.f32.mrf.mxu1 }
  0xda   : > { %v784_v11 = vmax.f32 %v761_v5, %v781_v8 }
  0xdc   : > { %1409 = vmatmul.msk.f32.vlgmr.msra.gmra.mxu2 %vm269_vm2, %v784_v11  ;;  %1412 = vmatmul.msk.f32.vlgmr.msra.gmra.mxu3 %vm269_vm2, %v784_v11 }
  0xdd   : > { %1445 = vmatpush.msk.msra.mxu2 %vm2048_vm3, %v1694_v54  ;;  %1448 = vmatpush.msk.msra.mxu3 %vm2052_vm4, %v1694_v54 }
  0xdf   : > { %1446 = vmatpush.msk.msra.mxu2 %vm2063_vm5, %v1694_v54  ;;  %1449 = vmatpush.msk.msra.mxu3 %vm2068_vm6, %v1694_v54 }
  0xe1   : > { %v878_v12 = vpop.f32.mrf.mxu0  ;;  %v898_v13 = vpop.f32.mrf.mxu1 }
  0xe2   : > { %v901_v15 = vmax.f32 %v878_v12, %v898_v13 }
  0xe4   : > { %1428 = vmatmul.msk.f32.vlgmr.msrb.gmra.mxu2 %vm269_vm2, %v901_v15  ;;  %1431 = vmatmul.msk.f32.vlgmr.msrb.gmra.mxu3 %vm269_vm2, %v901_v15 }
  0xe5   : > { %1464 = vmatpush.msk.msrb.mxu2 %vm2048_vm3, %v1694_v54  ;;  %1467 = vmatpush.msk.msrb.mxu3 %vm2052_vm4, %v1694_v54 }
  0xe7   : > { %1465 = vmatpush.msk.msrb.mxu2 %vm2063_vm5, %v1694_v54  ;;  %1468 = vmatpush.msk.msrb.mxu3 %vm2068_vm6, %v1694_v54 }
  0xe9   : > { %v995_v17 = vpop.f32.mrf.mxu0  ;;  %v1015_v18 = vpop.f32.mrf.mxu1 }
  0xea   : > { %v1018_v19 = vmax.f32 %v995_v17, %v1015_v18 }
  0xec   : > { %1447 = vmatmul.msk.f32.vlgmr.msra.gmra.mxu2 %vm269_vm2, %v1018_v19  ;;  %1450 = vmatmul.msk.f32.vlgmr.msra.gmra.mxu3 %vm269_vm2, %v1018_v19 }
  0xf1   : > { %v1112_v20 = vpop.f32.mrf.mxu0  ;;  %v1132_v21 = vpop.f32.mrf.mxu1 }
  0xf2   : > { %v1135_v22 = vmax.f32 %v1112_v20, %v1132_v21 }
  0xf4   : > { %1466 = vmatmul.msk.f32.vlgmr.msrb.gmra.mxu2 %vm269_vm2, %v1135_v22  ;;  %1469 = vmatmul.msk.f32.vlgmr.msrb.gmra.mxu3 %vm269_vm2, %v1135_v22 }
 0x13f   : > { %v337_v23 = vpop.f32.mrf.mxu2  ;;  %v357_v24 = vpop.f32.mrf.mxu3 }
 0x140   : > { %v360_v25 = vmax.f32 %v337_v23, %v357_v24 }
 0x142   : > { %362 = vst.msk [vmem:[%s2180_s26] sm:$0xff] %vm361_vm7, %v360_v25 }
 0x147   : > { %v454_v26 = vpop.f32.mrf.mxu2  ;;  %v474_v27 = vpop.f32.mrf.mxu3 }
 0x148   : > { %v477_v28 = vmax.f32 %v454_v26, %v474_v27 }
 0x14a   : > { %1356 = vst.msk [vmem:[%s2180_s26 + $0x8] sm:$0xff] %vm361_vm7, %v477_v28 }
 0x14f   : > { %v571_v31 = vpop.f32.mrf.mxu2  ;;  %v591_v32 = vpop.f32.mrf.mxu3 }
 0x150   : > { %v594_v33 = vmax.f32 %v571_v31, %v591_v32 }
 0x152   : > { %1375 = vst.msk [vmem:[%s2180_s26 + $0x10] sm:$0xff] %vm361_vm7, %v594_v33 }
 0x157   : > { %v688_v34 = vpop.f32.mrf.mxu2  ;;  %v708_v35 = vpop.f32.mrf.mxu3 }
 0x158   : > { %v711_v36 = vmax.f32 %v688_v34, %v708_v35 }
 0x15a   : > { %1394 = vst.msk [vmem:[%s2180_s26 + $0x18] sm:$0xff] %vm361_vm7, %v711_v36 }
 0x15f   : > { %v805_v37 = vpop.f32.mrf.mxu2  ;;  %v825_v38 = vpop.f32.mrf.mxu3 }
 0x160   : > { %v828_v39 = vmax.f32 %v805_v37, %v825_v38 }
 0x162   : > { %1413 = vst.msk [vmem:[%s2180_s26 + $0x20] sm:$0xff] %vm361_vm7, %v828_v39 }
 0x167   : > { %v922_v40 = vpop.f32.mrf.mxu2  ;;  %v942_v41 = vpop.f32.mrf.mxu3 }
 0x168   : > { %v945_v42 = vmax.f32 %v922_v40, %v942_v41 }
 0x16a   : > { %1432 = vst.msk [vmem:[%s2180_s26 + $0x28] sm:$0xff] %vm361_vm7, %v945_v42 }
 0x16f   : > { %v1039_v43 = vpop.f32.mrf.mxu2  ;;  %v1059_v44 = vpop.f32.mrf.mxu3 }
 0x170   : > { %v1062_v45 = vmax.f32 %v1039_v43, %v1059_v44 }
 0x172   : > { %1451 = vst.msk [vmem:[%s2180_s26 + $0x30] sm:$0xff] %vm361_vm7, %v1062_v45 }
 0x177   : > { %v1156_v46 = vpop.f32.mrf.mxu2  ;;  %v1176_v47 = vpop.f32.mrf.mxu3 }
 0x178   : > { %v1179_v48 = vmax.f32 %v1156_v46, %v1176_v47 }
 0x17a   : > { %1470 = vst.msk [vmem:[%s2180_s26 + $0x38] sm:$0xff] %vm361_vm7, %v1179_v48 }
 0x17b   : > { %1629 = shalt.err (!%p1626_p1)
}
 0x17c   : > { %s1695_s17 = smov 128   ;;  %s1696_s30 = smov 8  }
 0x17d   : > { %1484 = dma.vmem_to_hbm [thread:$0]  (%p1764_p8), %s1198_s20, 1024, %s1200_s6, %s1183_s12, %s1695_s17, %s1695_s17, %s1696_s30  }
 0x17e PF: > { %s1214_s3 = sand.u32 1, %s1668_s9   ;;  %p1495_p2 = pnand %p1307_p13, %p1768_p9 }
 0x17f   : > { %s1215_s27 = scalar_lea.sflag [#allocation4], %s1214_s3 }
 0x180   : > { %p1496_p4 = pneg %p1495_p2 }
 0x182   : > { %1663 = dma.done.wait (%p1496_p4), %s1215_s27, 1024  }
 0x183   : > { %1665 = vsyncadd (%p1496_p4), %s1215_s27, 4294966272  ;;  %s19_s14 = sadd.s32 1, %s1688_s14   ;;  %s2257_s9 = smov %s1672_s10 }
 0x184   : > { %p16_p6 = scmp.ge.s32.totalorder %s19_s14, 4   ;;  %s2258_s10 = smov %s1676_s11 }
 0x185   : > { %s2259_s11 = smov %s1806_s19  ;;  %s2260_s12 = smov %s1684_s13 }
 0x186   : > { %s2261_s13 = smov %s2263_s28  ;;  %18 = sbr.rel (!%p16_p6) target bundleno = 7 (0x7), region = 88 }
 0x18b   :  { %1221 = vsyncpa [#allocation3], 1 }
 0x18c   :  { %1223 = vsyncpa [#allocation3 + $0x1], 1 }
 0x18d   :  { %1224 = vsyncpa [#allocation4], 1 }
 0x18e   :  { %1226 = vsyncpa [#allocation4 + $0x1], 1 }
 0x18f   :  { %1227 = vsyncpa [#allocation5], 1 }
 0x190   :  { %1229 = vsyncpa [#allocation5 + $0x1], 1 }

</bundles_post_ra>
